<compile_context>
chip_gen: v7x
topology: tpu7x:2x2x1
jax: 0.10.0
libtpu: 0.0.40
codegen_flags: <defaults>
</compile_context>

<pallas_src>
import jax
import jax.numpy as jnp
import numpy as np
from jax import lax
from jax.experimental import pallas as pl
from jax.experimental.pallas import tpu as pltpu

HIDDEN_SIZE = 128
EMBED_DIM = 100
NUM_LAYERS = 1
_SUBLANE = 8
_LANE = 128


def _round_up(x, m):
    return ((x + m - 1) // m) * m


def _pick_time_chunk(s, max_chunk=128):
    ts = min(s, max_chunk)
    while s % ts:
        ts -= 1
    return ts


# --------------------------- LSTM recurrence kernel --------------------------
# Per chunk: (1) one dense bf16 MXU matmul projects the gathered embeddings of all
# ts timesteps into pre-biased input gates (f32, VMEM scratch); (2) the serial
# recurrence does only h @ W_hh^T + gate nonlinearities + c/h update per step,
# writing per-step hidden states into an f32 scratch that is flushed to the bf16
# output block once per chunk.
def lstm_kernel(emb_ref, wih_ref, bias_ref, whh_ref, h0_ref, c0_ref,
                out_ref, hN_ref, cN_ref, gx_scr, out_scr, h_scr, c_scr):
    chunk = pl.program_id(0)

    @pl.when(chunk == 0)
    def _():
        h_scr[...] = h0_ref[...]
        c_scr[...] = c0_ref[...]

    Bp = h0_ref.shape[0]
    H = h0_ref.shape[-1]
    ts = out_scr.shape[0] // Bp

    # Chunk-level input projection (bf16 MXU, f32 accumulation) + merged biases.
    gx_scr[...] = (jnp.dot(emb_ref[...], wih_ref[...],
                           preferred_element_type=jnp.float32) + bias_ref[...])

    def sigm(x):  # single EUP tanh instead of exp + reciprocal
        return 0.5 * (1.0 + jnp.tanh(0.5 * x))

    def step(t, carry):
        h, c = carry
        r0 = pl.multiple_of(t * Bp, _SUBLANE)
        gates = gx_scr[pl.ds(r0, Bp), :] + jnp.dot(
            h.astype(jnp.bfloat16), whh_ref[...],
            preferred_element_type=jnp.float32)
        i_g = sigm(gates[:, 0 * H:1 * H])
        f_g = sigm(gates[:, 1 * H:2 * H])
        g_g = jnp.tanh(gates[:, 2 * H:3 * H])
        o_g = sigm(gates[:, 3 * H:4 * H])
        c_new = f_g * c + i_g * g_g
        h_new = o_g * jnp.tanh(c_new)
        out_scr[pl.ds(r0, Bp), :] = h_new
        return h_new, c_new

    h, c = lax.fori_loop(0, ts, step, (h_scr[...], c_scr[...]),
                         unroll=min(8, ts))
    h_scr[...] = h
    c_scr[...] = c
    # Single dense, lane/sublane-aligned converting store of the chunk's outputs.
    out_ref[...] = out_scr[...].astype(out_ref.dtype)

    # NOTE: hN/cN rely on resident-output-block semantics (index_map constant across
    # the grid); they are only written on the last chunk, after which the block is
    # flushed to HBM. Keep their BlockSpecs constant if this kernel is modified.
    @pl.when(chunk == pl.num_programs(0) - 1)
    def _():
        hN_ref[...] = h
        cN_ref[...] = c


def lstm_forward(emb2d_bf16, wih_t, bias_row, whh_t, h0, c0):
    """emb2d: (S*Bp, Ep) bf16; wih_t: (Ep, 4H) bf16; bias_row: (1, 4H) f32;
       whh_t: (H, 4H) bf16; h0, c0: (Bp, H) f32."""
    R, Ep = emb2d_bf16.shape
    Bp, H = h0.shape
    G = whh_t.shape[1]
    S = R // Bp
    ts = _pick_time_chunk(S)
    n_chunks = S // ts
    cost = pl.CostEstimate(
        flops=2 * R * Ep * G + 2 * S * Bp * H * G + 10 * R * G,
        transcendentals=5 * S * Bp * H,
        bytes_accessed=(R * Ep * 2 + R * H * 2 + Ep * G * 2 + H * G * 2
                        + G * 4 + 4 * Bp * H * 4),
    )
    return pl.pallas_call(
        lstm_kernel,
        out_shape=(jax.ShapeDtypeStruct((R, H), jnp.bfloat16),
                   jax.ShapeDtypeStruct((Bp, H), jnp.float32),
                   jax.ShapeDtypeStruct((Bp, H), jnp.float32)),
        grid=(n_chunks,),
        in_specs=[
            pl.BlockSpec((ts * Bp, Ep), lambda c: (c, 0)),   # gathered embeddings (bf16)
            pl.BlockSpec((Ep, G), lambda c: (0, 0)),         # W_ih^T (bf16, E padded)
            pl.BlockSpec((1, G), lambda c: (0, 0)),          # b_ih + b_hh (f32)
            pl.BlockSpec((H, G), lambda c: (0, 0)),          # W_hh^T (bf16)
            pl.BlockSpec((Bp, H), lambda c: (0, 0)),         # h0
            pl.BlockSpec((Bp, H), lambda c: (0, 0)),         # c0
        ],
        out_specs=[
            pl.BlockSpec((ts * Bp, H), lambda c: (c, 0)),    # per-step hidden (bf16)
            pl.BlockSpec((Bp, H), lambda c: (0, 0)),         # h_N (resident, last chunk)
            pl.BlockSpec((Bp, H), lambda c: (0, 0)),         # c_N
        ],
        scratch_shapes=[pltpu.VMEM((ts * Bp, G), jnp.float32),   # projected input gates
                        pltpu.VMEM((ts * Bp, H), jnp.float32),   # chunk outputs (f32)
                        pltpu.VMEM((Bp, H), jnp.float32),        # h state
                        pltpu.VMEM((Bp, H), jnp.float32)],       # c state
        compiler_params=pltpu.CompilerParams(
            dimension_semantics=("arbitrary",)),                 # sequential recurrence
        cost_estimate=cost,
    )(emb2d_bf16, wih_t, bias_row, whh_t, h0, c0)


# ------------------------------- Linear kernel --------------------------------
def fc_kernel(x_ref, w_ref, b_ref, o_ref):
    o_ref[...] = (jnp.dot(x_ref[...], w_ref[...],
                          preferred_element_type=jnp.float32) + b_ref[...])


def fc_forward(x2d_bf16, w_pad_bf16, b_pad_row):
    """x2d: (M, H) bf16, M multiple of 8; w_pad: (H, Vp) bf16; b_pad: (1, Vp) f32
       (Vp a multiple of 128, pre-padded in __init__) -> (M, Vp) f32."""
    M, H = x2d_bf16.shape
    Vp = w_pad_bf16.shape[1]
    TN = min(512, Vp)
    while Vp % TN:
        TN -= _LANE
    TM = min(512, M)
    while M % TM:
        TM -= _SUBLANE
    cost = pl.CostEstimate(
        flops=2 * M * H * Vp,
        transcendentals=0,
        bytes_accessed=M * H * 2 + H * Vp * 2 + Vp * 4 + M * Vp * 4,
    )
    # Vocab axis OUTER: the (H, TN) weight tile's block index is constant across the
    # inner row axis, so each weight tile is DMA'd once instead of M//TM times.
    return pl.pallas_call(
        fc_kernel,
        out_shape=jax.ShapeDtypeStruct((M, Vp), jnp.float32),
        grid=(Vp // TN, M // TM),
        in_specs=[pl.BlockSpec((TM, H), lambda j, i: (i, 0)),
                  pl.BlockSpec((H, TN), lambda j, i: (0, j)),
                  pl.BlockSpec((1, TN), lambda j, i: (0, j))],
        out_specs=pl.BlockSpec((TM, TN), lambda j, i: (i, j)),
        compiler_params=pltpu.CompilerParams(
            dimension_semantics=("parallel", "parallel")),
        cost_estimate=cost,
    )(x2d_bf16, w_pad_bf16, b_pad_row)


# -------------------------------- Model wrapper --------------------------------
class PallasLM:
    def __init__(self, n_vocab, key):
        self.n_vocab = n_vocab
        self.hidden_size = HIDDEN_SIZE
        self.embedding_dim = EMBED_DIM
        self.num_layers = NUM_LAYERS
        H, E, V = self.hidden_size, self.embedding_dim, n_vocab
        Ep = _round_up(E, _LANE)
        Vp = _round_up(V, _LANE)
        self.Ep, self.Vp = Ep, Vp
        ks = jax.random.split(key, 7)
        bound = 1.0 / np.sqrt(H)
        # nn.Embedding default init: N(0, 1)
        self.embedding = jax.random.normal(ks[0], (V, E), jnp.float32)
        # nn.LSTM default init: U(-1/sqrt(H), 1/sqrt(H)), gate order i, f, g, o
        self.w_ih = jax.random.uniform(ks[1], (4 * H, E), jnp.float32, -bound, bound)
        self.w_hh = jax.random.uniform(ks[2], (4 * H, H), jnp.float32, -bound, bound)
        self.b_ih = jax.random.uniform(ks[3], (4 * H,), jnp.float32, -bound, bound)
        self.b_hh = jax.random.uniform(ks[4], (4 * H,), jnp.float32, -bound, bound)
        # nn.Linear(H, V) default init: U(-1/sqrt(H), 1/sqrt(H))
        self.w_fc = jax.random.uniform(ks[5], (V, H), jnp.float32, -bound, bound)
        self.b_fc = jax.random.uniform(ks[6], (V,), jnp.float32, -bound, bound)

        # Kernel-side pre-laid-out parameters (recompute if weights are reloaded):
        #  * bf16 embedding table padded E -> 128 lanes (gather feeds the in-kernel
        #    input projection directly);
        #  * W_ih^T / W_hh^T / W_fc^T in bf16 (native MXU), zero-padded to match;
        #  * FC weight/bias pre-padded to Vp (128-multiple) -> no per-call padding.
        self.embed_pad = jnp.pad(self.embedding,
                                 ((0, 0), (0, Ep - E))).astype(jnp.bfloat16)   # (V, Ep)
        self.wih_t = jnp.pad(jnp.transpose(self.w_ih),
                             ((0, Ep - E), (0, 0))).astype(jnp.bfloat16)       # (Ep, 4H)
        self.bias_row = (self.b_ih + self.b_hh)[None, :].astype(jnp.float32)   # (1, 4H)
        self.whh_t = jnp.transpose(self.w_hh).astype(jnp.bfloat16)             # (H, 4H)
        self.wfc_t = jnp.transpose(self.w_fc).astype(jnp.bfloat16)             # (H, V)
        self.wfc_pad = jnp.pad(self.wfc_t, ((0, 0), (0, Vp - V)))              # (H, Vp)
        self.bfc_pad = jnp.pad(self.b_fc, (0, Vp - V))[None, :]                # (1, Vp)

    def init_state(self, batch):
        z = jnp.zeros((self.num_layers, batch, self.hidden_size), jnp.float32)
        return (z, z)

    def forward(self, x, prev_state):
        # x: (S, B) int32 token ids (seq-major); prev_state: ((1,B,H), (1,B,H))
        S, B = x.shape
        H, V, Vp = self.hidden_size, self.n_vocab, self.Vp
        Bp = _round_up(B, _SUBLANE)                    # pad batch to full sublanes
        h0, c0 = prev_state[0][0], prev_state[1][0]    # (B, H)

        # Embedding gather of raw (padded, bf16) rows -- XLA glue gather.
        emb = jnp.take(self.embed_pad, x, axis=0)                       # (S, B, Ep) bf16
        emb = jnp.pad(emb, ((0, 0), (0, Bp - B), (0, 0)))
        emb2d = emb.reshape(S * Bp, self.Ep)
        h0p = jnp.pad(h0, ((0, Bp - B), (0, 0)))
        c0p = jnp.pad(c0, ((0, Bp - B), (0, 0)))

        out2d, hN, cN = lstm_forward(emb2d, self.wih_t, self.bias_row,
                                     self.whh_t, h0p, c0p)              # (S*Bp,H) bf16

        logits_p = fc_forward(out2d, self.wfc_pad, self.bfc_pad)        # (S*Bp, Vp) f32
        logits = logits_p.reshape(S, Bp, Vp)[:, :B, :V]
        return logits, (hN[None, :B, :], cN[None, :B, :])


# ----------------------- pure-JAX reference (matched precision) ----------------
# Uses the same bf16 operands / f32 accumulation as the kernels so the comparison
# validates the Pallas implementation (tiling, recurrence, BlockSpecs) tightly.
def reference_forward(m: PallasLM, x, prev_state):
    emb = jnp.take(m.embed_pad, x, axis=0)                              # (S, B, Ep) bf16
    gx = (jnp.dot(emb, m.wih_t, preferred_element_type=jnp.float32)
          + m.bias_row)                                                 # (S, B, 4H) f32
    h0, c0 = prev_state[0][0], prev_state[1][0]

    def sigm(z):
        return 0.5 * (1.0 + jnp.tanh(0.5 * z))

    def step(carry, gx_t):
        h, c = carry
        gates = gx_t + jnp.dot(h.astype(jnp.bfloat16), m.whh_t,
                               preferred_element_type=jnp.float32)
        i, f, g, o = jnp.split(gates, 4, axis=-1)
        i, f, o = sigm(i), sigm(f), sigm(o)
        g = jnp.tanh(g)
        c_new = f * c + i * g
        h_new = o * jnp.tanh(c_new)
        return (h_new, c_new), h_new

    (hN, cN), out = lax.scan(step, (h0, c0), gx)
    logits = (jnp.dot(out.astype(jnp.bfloat16), m.wfc_t,
                      preferred_element_type=jnp.float32) + m.b_fc)
    return logits, (hN[None], cN[None])


if __name__ == "__main__":
    key = jax.random.PRNGKey(0)
    k_param, k_tok = jax.random.split(key)

    n_vocab = 256
    seq_len, batch = 8, 4

    model = PallasLM(n_vocab, k_param)
    x = jax.random.randint(k_tok, (seq_len, batch), 0, n_vocab, dtype=jnp.int32)
    state0 = model.init_state(batch)

    logits, (hN, cN) = model.forward(x, state0)
    jax.block_until_ready((logits, hN, cN))

    ref_logits, (ref_hN, ref_cN) = reference_forward(model, x, state0)
    assert logits.shape == (seq_len, batch, n_vocab)
    assert hN.shape == (NUM_LAYERS, batch, HIDDEN_SIZE)
    assert cN.shape == (NUM_LAYERS, batch, HIDDEN_SIZE)
    np.testing.assert_allclose(np.asarray(logits), np.asarray(ref_logits),
                               rtol=1e-2, atol=1e-2)
    np.testing.assert_allclose(np.asarray(hN), np.asarray(ref_hN), rtol=1e-2, atol=1e-2)
    np.testing.assert_allclose(np.asarray(cN), np.asarray(ref_cN), rtol=1e-2, atol=1e-2)

    print("KERNEL_OK")
</pallas_src>

<mosaic_0001>
module attributes {stable_mosaic.version = 11 : i64} {
  func.func @lstm_kernel(%arg0: i32, %arg1: memref<64x128xbf16, #tpu.memory_space<vmem>>, %arg2: memref<128x512xbf16, #tpu.memory_space<vmem>>, %arg3: memref<1x512xf32, #tpu.memory_space<vmem>>, %arg4: memref<128x512xbf16, #tpu.memory_space<vmem>>, %arg5: memref<8x128xf32, #tpu.memory_space<vmem>>, %arg6: memref<8x128xf32, #tpu.memory_space<vmem>>, %arg7: memref<64x128xbf16, #tpu.memory_space<vmem>>, %arg8: memref<8x128xf32, #tpu.memory_space<vmem>>, %arg9: memref<8x128xf32, #tpu.memory_space<vmem>>, %arg10: memref<64x512xf32, #tpu.memory_space<vmem>>, %arg11: memref<64x128xf32, #tpu.memory_space<vmem>>, %arg12: memref<8x128xf32, #tpu.memory_space<vmem>>, %arg13: memref<8x128xf32, #tpu.memory_space<vmem>>) attributes {dimension_semantics = [#tpu.dimension_semantics<arbitrary>], iteration_bounds = array<i64: 1>, scalar_prefetch = 0 : i64, scratch_operands = 4 : i64, tpu.core_type = #tpu.core_type<tc>, window_params = [{transform_indices = @transform_0, window_bounds = array<i64: 64, 128>}, {pipeline_mode = #tpu.pipeline_mode<synchronous>, transform_indices = @transform_1, window_bounds = array<i64: 128, 512>}, {pipeline_mode = #tpu.pipeline_mode<synchronous>, transform_indices = @transform_2, window_bounds = array<i64: 1, 512>}, {pipeline_mode = #tpu.pipeline_mode<synchronous>, transform_indices = @transform_3, window_bounds = array<i64: 128, 512>}, {pipeline_mode = #tpu.pipeline_mode<synchronous>, transform_indices = @transform_4, window_bounds = array<i64: 8, 128>}, {pipeline_mode = #tpu.pipeline_mode<synchronous>, transform_indices = @transform_5, window_bounds = array<i64: 8, 128>}, {transform_indices = @transform_6, window_bounds = array<i64: 64, 128>}, {pipeline_mode = #tpu.pipeline_mode<synchronous>, transform_indices = @transform_7, window_bounds = array<i64: 8, 128>}, {pipeline_mode = #tpu.pipeline_mode<synchronous>, transform_indices = @transform_8, window_bounds = array<i64: 8, 128>}]} {
    %c0_i32 = arith.constant 0 : i32
    %0 = arith.cmpi eq, %arg0, %c0_i32 : i32
    %1 = arith.extui %0 : i1 to i32
    %c0_i32_0 = arith.constant 0 : i32
    %2 = arith.cmpi ne, %1, %c0_i32_0 : i32
    scf.if %2 {
      %c0_143 = arith.constant 0 : index
      %c0_144 = arith.constant 0 : index
      %348 = vector.load %arg5[%c0_143, %c0_144] : memref<8x128xf32, #tpu.memory_space<vmem>>, vector<8x128xf32>
      %c0_145 = arith.constant 0 : index
      %c0_146 = arith.constant 0 : index
      %349 = vector.load %arg12[%c0_145, %c0_146] : memref<8x128xf32, #tpu.memory_space<vmem>>, vector<8x128xf32>
      tpu.vector_store %arg12[%c0_145, %c0_146], %348 {strides = array<i32>} : memref<8x128xf32, #tpu.memory_space<vmem>>, vector<8x128xf32>,
      %c0_147 = arith.constant 0 : index
      %c0_148 = arith.constant 0 : index
      %350 = vector.load %arg6[%c0_147, %c0_148] : memref<8x128xf32, #tpu.memory_space<vmem>>, vector<8x128xf32>
      %c0_149 = arith.constant 0 : index
      %c0_150 = arith.constant 0 : index
      %351 = vector.load %arg13[%c0_149, %c0_150] : memref<8x128xf32, #tpu.memory_space<vmem>>, vector<8x128xf32>
      tpu.vector_store %arg13[%c0_149, %c0_150], %350 {strides = array<i32>} : memref<8x128xf32, #tpu.memory_space<vmem>>, vector<8x128xf32>,
    } else {
    }
    %c0 = arith.constant 0 : index
    %c0_1 = arith.constant 0 : index
    %3 = vector.load %arg1[%c0, %c0_1] : memref<64x128xbf16, #tpu.memory_space<vmem>>, vector<64x128xbf16>
    %c0_2 = arith.constant 0 : index
    %c0_3 = arith.constant 0 : index
    %4 = vector.load %arg2[%c0_2, %c0_3] : memref<128x512xbf16, #tpu.memory_space<vmem>>, vector<128x512xbf16>
    %cst = arith.constant dense<0.000000e+00> : vector<64x512xf32>
    %5 = tpu.matmul %3, %4, %cst {dimension_numbers = #tpu.dot_dimension_numbers<[1], [0], [0], [1], [0, 0, 1, 1], [], []>} : vector<64x128xbf16>, vector<128x512xbf16>, vector<64x512xf32> -> vector<64x512xf32>
    %c0_4 = arith.constant 0 : index
    %c0_5 = arith.constant 0 : index
    %6 = vector.load %arg3[%c0_4, %c0_5] : memref<1x512xf32, #tpu.memory_space<vmem>>, vector<1x512xf32>
    %7 = vector.broadcast %6 : vector<1x512xf32> to vector<64x512xf32>
    %8 = arith.addf %5, %7 : vector<64x512xf32>
    %c0_6 = arith.constant 0 : index
    %c0_7 = arith.constant 0 : index
    %9 = vector.load %arg10[%c0_6, %c0_7] : memref<64x512xf32, #tpu.memory_space<vmem>>, vector<64x512xf32>
    tpu.vector_store %arg10[%c0_6, %c0_7], %8 {strides = array<i32>} : memref<64x512xf32, #tpu.memory_space<vmem>>, vector<64x512xf32>,
    %c0_8 = arith.constant 0 : index
    %c0_9 = arith.constant 0 : index
    %10 = vector.load %arg12[%c0_8, %c0_9] : memref<8x128xf32, #tpu.memory_space<vmem>>, vector<8x128xf32>
    %c0_10 = arith.constant 0 : index
    %c0_11 = arith.constant 0 : index
    %11 = vector.load %arg13[%c0_10, %c0_11] : memref<8x128xf32, #tpu.memory_space<vmem>>, vector<8x128xf32>
    %c0_i32_12 = arith.constant 0 : i32
    %c8_i32 = arith.constant 8 : i32
    %12 = arith.muli %c0_i32_12, %c8_i32 : i32
    %13 = tpu.assume_multiple %12, 8 : i32
    %14 = arith.index_cast %13 : i32 to index
    %c0_13 = arith.constant 0 : index
    %15 = vector.load %arg10[%14, %c0_13] : memref<64x512xf32, #tpu.memory_space<vmem>>, vector<8x512xf32>
    %16 = arith.truncf %10 : vector<8x128xf32> to vector<8x128xbf16>
    %c0_14 = arith.constant 0 : index
    %c0_15 = arith.constant 0 : index
    %17 = vector.load %arg4[%c0_14, %c0_15] : memref<128x512xbf16, #tpu.memory_space<vmem>>, vector<128x512xbf16>
    %cst_16 = arith.constant dense<0.000000e+00> : vector<8x512xf32>
    %18 = tpu.matmul %16, %17, %cst_16 {dimension_numbers = #tpu.dot_dimension_numbers<[1], [0], [0], [1], [0, 0, 1, 1], [], []>} : vector<8x128xbf16>, vector<128x512xbf16>, vector<8x512xf32> -> vector<8x512xf32>
    %19 = arith.addf %15, %18 : vector<8x512xf32>
    %20 = vector.extract_strided_slice %19 {offsets = [0, 0], sizes = [8, 128], strides = [1, 1]} : vector<8x512xf32> to vector<8x128xf32>
    %cst_17 = arith.constant 5.000000e-01 : f32
    %21 = vector.broadcast %cst_17 : f32 to vector<8x128xf32>
    %22 = arith.mulf %21, %20 : vector<8x128xf32>
    %23 = math.tanh %22 : vector<8x128xf32>
    %cst_18 = arith.constant 1.000000e+00 : f32
    %24 = vector.broadcast %cst_18 : f32 to vector<8x128xf32>
    %25 = arith.addf %24, %23 : vector<8x128xf32>
    %cst_19 = arith.constant 5.000000e-01 : f32
    %26 = vector.broadcast %cst_19 : f32 to vector<8x128xf32>
    %27 = arith.mulf %26, %25 : vector<8x128xf32>
    %28 = vector.extract_strided_slice %19 {offsets = [0, 128], sizes = [8, 128], strides = [1, 1]} : vector<8x512xf32> to vector<8x128xf32>
    %cst_20 = arith.constant 5.000000e-01 : f32
    %29 = vector.broadcast %cst_20 : f32 to vector<8x128xf32>
    %30 = arith.mulf %29, %28 : vector<8x128xf32>
    %31 = math.tanh %30 : vector<8x128xf32>
    %cst_21 = arith.constant 1.000000e+00 : f32
    %32 = vector.broadcast %cst_21 : f32 to vector<8x128xf32>
    %33 = arith.addf %32, %31 : vector<8x128xf32>
    %cst_22 = arith.constant 5.000000e-01 : f32
    %34 = vector.broadcast %cst_22 : f32 to vector<8x128xf32>
    %35 = arith.mulf %34, %33 : vector<8x128xf32>
    %36 = vector.extract_strided_slice %19 {offsets = [0, 256], sizes = [8, 128], strides = [1, 1]} : vector<8x512xf32> to vector<8x128xf32>
    %37 = math.tanh %36 : vector<8x128xf32>
    %38 = vector.extract_strided_slice %19 {offsets = [0, 384], sizes = [8, 128], strides = [1, 1]} : vector<8x512xf32> to vector<8x128xf32>
    %cst_23 = arith.constant 5.000000e-01 : f32
    %39 = vector.broadcast %cst_23 : f32 to vector<8x128xf32>
    %40 = arith.mulf %39, %38 : vector<8x128xf32>
    %41 = math.tanh %40 : vector<8x128xf32>
    %cst_24 = arith.constant 1.000000e+00 : f32
    %42 = vector.broadcast %cst_24 : f32 to vector<8x128xf32>
    %43 = arith.addf %42, %41 : vector<8x128xf32>
    %cst_25 = arith.constant 5.000000e-01 : f32
    %44 = vector.broadcast %cst_25 : f32 to vector<8x128xf32>
    %45 = arith.mulf %44, %43 : vector<8x128xf32>
    %46 = arith.mulf %35, %11 : vector<8x128xf32>
    %47 = arith.mulf %27, %37 : vector<8x128xf32>
    %48 = arith.addf %46, %47 : vector<8x128xf32>
    %49 = math.tanh %48 : vector<8x128xf32>
    %50 = arith.mulf %45, %49 : vector<8x128xf32>
    %51 = arith.index_cast %13 : i32 to index
    %c0_26 = arith.constant 0 : index
    %52 = vector.load %arg11[%51, %c0_26] : memref<64x128xf32, #tpu.memory_space<vmem>>, vector<8x128xf32>
    tpu.vector_store %arg11[%51, %c0_26], %50 {strides = array<i32>} : memref<64x128xf32, #tpu.memory_space<vmem>>, vector<8x128xf32>,
    %c1_i32 = arith.constant 1 : i32
    %c8_i32_27 = arith.constant 8 : i32
    %53 = arith.muli %c1_i32, %c8_i32_27 : i32
    %54 = tpu.assume_multiple %53, 8 : i32
    %55 = arith.index_cast %54 : i32 to index
    %c0_28 = arith.constant 0 : index
    %56 = vector.load %arg10[%55, %c0_28] : memref<64x512xf32, #tpu.memory_space<vmem>>, vector<8x512xf32>
    %57 = arith.truncf %50 : vector<8x128xf32> to vector<8x128xbf16>
    %c0_29 = arith.constant 0 : index
    %c0_30 = arith.constant 0 : index
    %58 = vector.load %arg4[%c0_29, %c0_30] : memref<128x512xbf16, #tpu.memory_space<vmem>>, vector<128x512xbf16>
    %cst_31 = arith.constant dense<0.000000e+00> : vector<8x512xf32>
    %59 = tpu.matmul %57, %58, %cst_31 {dimension_numbers = #tpu.dot_dimension_numbers<[1], [0], [0], [1], [0, 0, 1, 1], [], []>} : vector<8x128xbf16>, vector<128x512xbf16>, vector<8x512xf32> -> vector<8x512xf32>
    %60 = arith.addf %56, %59 : vector<8x512xf32>
    %61 = vector.extract_strided_slice %60 {offsets = [0, 0], sizes = [8, 128], strides = [1, 1]} : vector<8x512xf32> to vector<8x128xf32>
    %cst_32 = arith.constant 5.000000e-01 : f32
    %62 = vector.broadcast %cst_32 : f32 to vector<8x128xf32>
    %63 = arith.mulf %62, %61 : vector<8x128xf32>
    %64 = math.tanh %63 : vector<8x128xf32>
    %cst_33 = arith.constant 1.000000e+00 : f32
    %65 = vector.broadcast %cst_33 : f32 to vector<8x128xf32>
    %66 = arith.addf %65, %64 : vector<8x128xf32>
    %cst_34 = arith.constant 5.000000e-01 : f32
    %67 = vector.broadcast %cst_34 : f32 to vector<8x128xf32>
    %68 = arith.mulf %67, %66 : vector<8x128xf32>
    %69 = vector.extract_strided_slice %60 {offsets = [0, 128], sizes = [8, 128], strides = [1, 1]} : vector<8x512xf32> to vector<8x128xf32>
    %cst_35 = arith.constant 5.000000e-01 : f32
    %70 = vector.broadcast %cst_35 : f32 to vector<8x128xf32>
    %71 = arith.mulf %70, %69 : vector<8x128xf32>
    %72 = math.tanh %71 : vector<8x128xf32>
    %cst_36 = arith.constant 1.000000e+00 : f32
    %73 = vector.broadcast %cst_36 : f32 to vector<8x128xf32>
    %74 = arith.addf %73, %72 : vector<8x128xf32>
    %cst_37 = arith.constant 5.000000e-01 : f32
    %75 = vector.broadcast %cst_37 : f32 to vector<8x128xf32>
    %76 = arith.mulf %75, %74 : vector<8x128xf32>
    %77 = vector.extract_strided_slice %60 {offsets = [0, 256], sizes = [8, 128], strides = [1, 1]} : vector<8x512xf32> to vector<8x128xf32>
    %78 = math.tanh %77 : vector<8x128xf32>
    %79 = vector.extract_strided_slice %60 {offsets = [0, 384], sizes = [8, 128], strides = [1, 1]} : vector<8x512xf32> to vector<8x128xf32>
    %cst_38 = arith.constant 5.000000e-01 : f32
    %80 = vector.broadcast %cst_38 : f32 to vector<8x128xf32>
    %81 = arith.mulf %80, %79 : vector<8x128xf32>
    %82 = math.tanh %81 : vector<8x128xf32>
    %cst_39 = arith.constant 1.000000e+00 : f32
    %83 = vector.broadcast %cst_39 : f32 to vector<8x128xf32>
    %84 = arith.addf %83, %82 : vector<8x128xf32>
    %cst_40 = arith.constant 5.000000e-01 : f32
    %85 = vector.broadcast %cst_40 : f32 to vector<8x128xf32>
    %86 = arith.mulf %85, %84 : vector<8x128xf32>
    %87 = arith.mulf %76, %48 : vector<8x128xf32>
    %88 = arith.mulf %68, %78 : vector<8x128xf32>
    %89 = arith.addf %87, %88 : vector<8x128xf32>
    %90 = math.tanh %89 : vector<8x128xf32>
    %91 = arith.mulf %86, %90 : vector<8x128xf32>
    %92 = arith.index_cast %54 : i32 to index
    %c0_41 = arith.constant 0 : index
    %93 = vector.load %arg11[%92, %c0_41] : memref<64x128xf32, #tpu.memory_space<vmem>>, vector<8x128xf32>
    tpu.vector_store %arg11[%92, %c0_41], %91 {strides = array<i32>} : memref<64x128xf32, #tpu.memory_space<vmem>>, vector<8x128xf32>,
    %c2_i32 = arith.constant 2 : i32
    %c8_i32_42 = arith.constant 8 : i32
    %94 = arith.muli %c2_i32, %c8_i32_42 : i32
    %95 = tpu.assume_multiple %94, 8 : i32
    %96 = arith.index_cast %95 : i32 to index
    %c0_43 = arith.constant 0 : index
    %97 = vector.load %arg10[%96, %c0_43] : memref<64x512xf32, #tpu.memory_space<vmem>>, vector<8x512xf32>
    %98 = arith.truncf %91 : vector<8x128xf32> to vector<8x128xbf16>
    %c0_44 = arith.constant 0 : index
    %c0_45 = arith.constant 0 : index
    %99 = vector.load %arg4[%c0_44, %c0_45] : memref<128x512xbf16, #tpu.memory_space<vmem>>, vector<128x512xbf16>
    %cst_46 = arith.constant dense<0.000000e+00> : vector<8x512xf32>
    %100 = tpu.matmul %98, %99, %cst_46 {dimension_numbers = #tpu.dot_dimension_numbers<[1], [0], [0], [1], [0, 0, 1, 1], [], []>} : vector<8x128xbf16>, vector<128x512xbf16>, vector<8x512xf32> -> vector<8x512xf32>
    %101 = arith.addf %97, %100 : vector<8x512xf32>
    %102 = vector.extract_strided_slice %101 {offsets = [0, 0], sizes = [8, 128], strides = [1, 1]} : vector<8x512xf32> to vector<8x128xf32>
    %cst_47 = arith.constant 5.000000e-01 : f32
    %103 = vector.broadcast %cst_47 : f32 to vector<8x128xf32>
    %104 = arith.mulf %103, %102 : vector<8x128xf32>
    %105 = math.tanh %104 : vector<8x128xf32>
    %cst_48 = arith.constant 1.000000e+00 : f32
    %106 = vector.broadcast %cst_48 : f32 to vector<8x128xf32>
    %107 = arith.addf %106, %105 : vector<8x128xf32>
    %cst_49 = arith.constant 5.000000e-01 : f32
    %108 = vector.broadcast %cst_49 : f32 to vector<8x128xf32>
    %109 = arith.mulf %108, %107 : vector<8x128xf32>
    %110 = vector.extract_strided_slice %101 {offsets = [0, 128], sizes = [8, 128], strides = [1, 1]} : vector<8x512xf32> to vector<8x128xf32>
    %cst_50 = arith.constant 5.000000e-01 : f32
    %111 = vector.broadcast %cst_50 : f32 to vector<8x128xf32>
    %112 = arith.mulf %111, %110 : vector<8x128xf32>
    %113 = math.tanh %112 : vector<8x128xf32>
    %cst_51 = arith.constant 1.000000e+00 : f32
    %114 = vector.broadcast %cst_51 : f32 to vector<8x128xf32>
    %115 = arith.addf %114, %113 : vector<8x128xf32>
    %cst_52 = arith.constant 5.000000e-01 : f32
    %116 = vector.broadcast %cst_52 : f32 to vector<8x128xf32>
    %117 = arith.mulf %116, %115 : vector<8x128xf32>
    %118 = vector.extract_strided_slice %101 {offsets = [0, 256], sizes = [8, 128], strides = [1, 1]} : vector<8x512xf32> to vector<8x128xf32>
    %119 = math.tanh %118 : vector<8x128xf32>
    %120 = vector.extract_strided_slice %101 {offsets = [0, 384], sizes = [8, 128], strides = [1, 1]} : vector<8x512xf32> to vector<8x128xf32>
    %cst_53 = arith.constant 5.000000e-01 : f32
    %121 = vector.broadcast %cst_53 : f32 to vector<8x128xf32>
    %122 = arith.mulf %121, %120 : vector<8x128xf32>
    %123 = math.tanh %122 : vector<8x128xf32>
    %cst_54 = arith.constant 1.000000e+00 : f32
    %124 = vector.broadcast %cst_54 : f32 to vector<8x128xf32>
    %125 = arith.addf %124, %123 : vector<8x128xf32>
    %cst_55 = arith.constant 5.000000e-01 : f32
    %126 = vector.broadcast %cst_55 : f32 to vector<8x128xf32>
    %127 = arith.mulf %126, %125 : vector<8x128xf32>
    %128 = arith.mulf %117, %89 : vector<8x128xf32>
    %129 = arith.mulf %109, %119 : vector<8x128xf32>
    %130 = arith.addf %128, %129 : vector<8x128xf32>
    %131 = math.tanh %130 : vector<8x128xf32>
    %132 = arith.mulf %127, %131 : vector<8x128xf32>
    %133 = arith.index_cast %95 : i32 to index
    %c0_56 = arith.constant 0 : index
    %134 = vector.load %arg11[%133, %c0_56] : memref<64x128xf32, #tpu.memory_space<vmem>>, vector<8x128xf32>
    tpu.vector_store %arg11[%133, %c0_56], %132 {strides = array<i32>} : memref<64x128xf32, #tpu.memory_space<vmem>>, vector<8x128xf32>,
    %c3_i32 = arith.constant 3 : i32
    %c8_i32_57 = arith.constant 8 : i32
    %135 = arith.muli %c3_i32, %c8_i32_57 : i32
    %136 = tpu.assume_multiple %135, 8 : i32
    %137 = arith.index_cast %136 : i32 to index
    %c0_58 = arith.constant 0 : index
    %138 = vector.load %arg10[%137, %c0_58] : memref<64x512xf32, #tpu.memory_space<vmem>>, vector<8x512xf32>
    %139 = arith.truncf %132 : vector<8x128xf32> to vector<8x128xbf16>
    %c0_59 = arith.constant 0 : index
    %c0_60 = arith.constant 0 : index
    %140 = vector.load %arg4[%c0_59, %c0_60] : memref<128x512xbf16, #tpu.memory_space<vmem>>, vector<128x512xbf16>
    %cst_61 = arith.constant dense<0.000000e+00> : vector<8x512xf32>
    %141 = tpu.matmul %139, %140, %cst_61 {dimension_numbers = #tpu.dot_dimension_numbers<[1], [0], [0], [1], [0, 0, 1, 1], [], []>} : vector<8x128xbf16>, vector<128x512xbf16>, vector<8x512xf32> -> vector<8x512xf32>
    %142 = arith.addf %138, %141 : vector<8x512xf32>
    %143 = vector.extract_strided_slice %142 {offsets = [0, 0], sizes = [8, 128], strides = [1, 1]} : vector<8x512xf32> to vector<8x128xf32>
    %cst_62 = arith.constant 5.000000e-01 : f32
    %144 = vector.broadcast %cst_62 : f32 to vector<8x128xf32>
    %145 = arith.mulf %144, %143 : vector<8x128xf32>
    %146 = math.tanh %145 : vector<8x128xf32>
    %cst_63 = arith.constant 1.000000e+00 : f32
    %147 = vector.broadcast %cst_63 : f32 to vector<8x128xf32>
    %148 = arith.addf %147, %146 : vector<8x128xf32>
    %cst_64 = arith.constant 5.000000e-01 : f32
    %149 = vector.broadcast %cst_64 : f32 to vector<8x128xf32>
    %150 = arith.mulf %149, %148 : vector<8x128xf32>
    %151 = vector.extract_strided_slice %142 {offsets = [0, 128], sizes = [8, 128], strides = [1, 1]} : vector<8x512xf32> to vector<8x128xf32>
    %cst_65 = arith.constant 5.000000e-01 : f32
    %152 = vector.broadcast %cst_65 : f32 to vector<8x128xf32>
    %153 = arith.mulf %152, %151 : vector<8x128xf32>
    %154 = math.tanh %153 : vector<8x128xf32>
    %cst_66 = arith.constant 1.000000e+00 : f32
    %155 = vector.broadcast %cst_66 : f32 to vector<8x128xf32>
    %156 = arith.addf %155, %154 : vector<8x128xf32>
    %cst_67 = arith.constant 5.000000e-01 : f32
    %157 = vector.broadcast %cst_67 : f32 to vector<8x128xf32>
    %158 = arith.mulf %157, %156 : vector<8x128xf32>
    %159 = vector.extract_strided_slice %142 {offsets = [0, 256], sizes = [8, 128], strides = [1, 1]} : vector<8x512xf32> to vector<8x128xf32>
    %160 = math.tanh %159 : vector<8x128xf32>
    %161 = vector.extract_strided_slice %142 {offsets = [0, 384], sizes = [8, 128], strides = [1, 1]} : vector<8x512xf32> to vector<8x128xf32>
    %cst_68 = arith.constant 5.000000e-01 : f32
    %162 = vector.broadcast %cst_68 : f32 to vector<8x128xf32>
    %163 = arith.mulf %162, %161 : vector<8x128xf32>
    %164 = math.tanh %163 : vector<8x128xf32>
    %cst_69 = arith.constant 1.000000e+00 : f32
    %165 = vector.broadcast %cst_69 : f32 to vector<8x128xf32>
    %166 = arith.addf %165, %164 : vector<8x128xf32>
    %cst_70 = arith.constant 5.000000e-01 : f32
    %167 = vector.broadcast %cst_70 : f32 to vector<8x128xf32>
    %168 = arith.mulf %167, %166 : vector<8x128xf32>
    %169 = arith.mulf %158, %130 : vector<8x128xf32>
    %170 = arith.mulf %150, %160 : vector<8x128xf32>
    %171 = arith.addf %169, %170 : vector<8x128xf32>
    %172 = math.tanh %171 : vector<8x128xf32>
    %173 = arith.mulf %168, %172 : vector<8x128xf32>
    %174 = arith.index_cast %136 : i32 to index
    %c0_71 = arith.constant 0 : index
    %175 = vector.load %arg11[%174, %c0_71] : memref<64x128xf32, #tpu.memory_space<vmem>>, vector<8x128xf32>
    tpu.vector_store %arg11[%174, %c0_71], %173 {strides = array<i32>} : memref<64x128xf32, #tpu.memory_space<vmem>>, vector<8x128xf32>,
    %c4_i32 = arith.constant 4 : i32
    %c8_i32_72 = arith.constant 8 : i32
    %176 = arith.muli %c4_i32, %c8_i32_72 : i32
    %177 = tpu.assume_multiple %176, 8 : i32
    %178 = arith.index_cast %177 : i32 to index
    %c0_73 = arith.constant 0 : index
    %179 = vector.load %arg10[%178, %c0_73] : memref<64x512xf32, #tpu.memory_space<vmem>>, vector<8x512xf32>
    %180 = arith.truncf %173 : vector<8x128xf32> to vector<8x128xbf16>
    %c0_74 = arith.constant 0 : index
    %c0_75 = arith.constant 0 : index
    %181 = vector.load %arg4[%c0_74, %c0_75] : memref<128x512xbf16, #tpu.memory_space<vmem>>, vector<128x512xbf16>
    %cst_76 = arith.constant dense<0.000000e+00> : vector<8x512xf32>
    %182 = tpu.matmul %180, %181, %cst_76 {dimension_numbers = #tpu.dot_dimension_numbers<[1], [0], [0], [1], [0, 0, 1, 1], [], []>} : vector<8x128xbf16>, vector<128x512xbf16>, vector<8x512xf32> -> vector<8x512xf32>
    %183 = arith.addf %179, %182 : vector<8x512xf32>
    %184 = vector.extract_strided_slice %183 {offsets = [0, 0], sizes = [8, 128], strides = [1, 1]} : vector<8x512xf32> to vector<8x128xf32>
    %cst_77 = arith.constant 5.000000e-01 : f32
    %185 = vector.broadcast %cst_77 : f32 to vector<8x128xf32>
    %186 = arith.mulf %185, %184 : vector<8x128xf32>
    %187 = math.tanh %186 : vector<8x128xf32>
    %cst_78 = arith.constant 1.000000e+00 : f32
    %188 = vector.broadcast %cst_78 : f32 to vector<8x128xf32>
    %189 = arith.addf %188, %187 : vector<8x128xf32>
    %cst_79 = arith.constant 5.000000e-01 : f32
    %190 = vector.broadcast %cst_79 : f32 to vector<8x128xf32>
    %191 = arith.mulf %190, %189 : vector<8x128xf32>
    %192 = vector.extract_strided_slice %183 {offsets = [0, 128], sizes = [8, 128], strides = [1, 1]} : vector<8x512xf32> to vector<8x128xf32>
    %cst_80 = arith.constant 5.000000e-01 : f32
    %193 = vector.broadcast %cst_80 : f32 to vector<8x128xf32>
    %194 = arith.mulf %193, %192 : vector<8x128xf32>
    %195 = math.tanh %194 : vector<8x128xf32>
    %cst_81 = arith.constant 1.000000e+00 : f32
    %196 = vector.broadcast %cst_81 : f32 to vector<8x128xf32>
    %197 = arith.addf %196, %195 : vector<8x128xf32>
    %cst_82 = arith.constant 5.000000e-01 : f32
    %198 = vector.broadcast %cst_82 : f32 to vector<8x128xf32>
    %199 = arith.mulf %198, %197 : vector<8x128xf32>
    %200 = vector.extract_strided_slice %183 {offsets = [0, 256], sizes = [8, 128], strides = [1, 1]} : vector<8x512xf32> to vector<8x128xf32>
    %201 = math.tanh %200 : vector<8x128xf32>
    %202 = vector.extract_strided_slice %183 {offsets = [0, 384], sizes = [8, 128], strides = [1, 1]} : vector<8x512xf32> to vector<8x128xf32>
    %cst_83 = arith.constant 5.000000e-01 : f32
    %203 = vector.broadcast %cst_83 : f32 to vector<8x128xf32>
    %204 = arith.mulf %203, %202 : vector<8x128xf32>
    %205 = math.tanh %204 : vector<8x128xf32>
    %cst_84 = arith.constant 1.000000e+00 : f32
    %206 = vector.broadcast %cst_84 : f32 to vector<8x128xf32>
    %207 = arith.addf %206, %205 : vector<8x128xf32>
    %cst_85 = arith.constant 5.000000e-01 : f32
    %208 = vector.broadcast %cst_85 : f32 to vector<8x128xf32>
    %209 = arith.mulf %208, %207 : vector<8x128xf32>
    %210 = arith.mulf %199, %171 : vector<8x128xf32>
    %211 = arith.mulf %191, %201 : vector<8x128xf32>
    %212 = arith.addf %210, %211 : vector<8x128xf32>
    %213 = math.tanh %212 : vector<8x128xf32>
    %214 = arith.mulf %209, %213 : vector<8x128xf32>
    %215 = arith.index_cast %177 : i32 to index
    %c0_86 = arith.constant 0 : index
    %216 = vector.load %arg11[%215, %c0_86] : memref<64x128xf32, #tpu.memory_space<vmem>>, vector<8x128xf32>
    tpu.vector_store %arg11[%215, %c0_86], %214 {strides = array<i32>} : memref<64x128xf32, #tpu.memory_space<vmem>>, vector<8x128xf32>,
    %c5_i32 = arith.constant 5 : i32
    %c8_i32_87 = arith.constant 8 : i32
    %217 = arith.muli %c5_i32, %c8_i32_87 : i32
    %218 = tpu.assume_multiple %217, 8 : i32
    %219 = arith.index_cast %218 : i32 to index
    %c0_88 = arith.constant 0 : index
    %220 = vector.load %arg10[%219, %c0_88] : memref<64x512xf32, #tpu.memory_space<vmem>>, vector<8x512xf32>
    %221 = arith.truncf %214 : vector<8x128xf32> to vector<8x128xbf16>
    %c0_89 = arith.constant 0 : index
    %c0_90 = arith.constant 0 : index
    %222 = vector.load %arg4[%c0_89, %c0_90] : memref<128x512xbf16, #tpu.memory_space<vmem>>, vector<128x512xbf16>
    %cst_91 = arith.constant dense<0.000000e+00> : vector<8x512xf32>
    %223 = tpu.matmul %221, %222, %cst_91 {dimension_numbers = #tpu.dot_dimension_numbers<[1], [0], [0], [1], [0, 0, 1, 1], [], []>} : vector<8x128xbf16>, vector<128x512xbf16>, vector<8x512xf32> -> vector<8x512xf32>
    %224 = arith.addf %220, %223 : vector<8x512xf32>
    %225 = vector.extract_strided_slice %224 {offsets = [0, 0], sizes = [8, 128], strides = [1, 1]} : vector<8x512xf32> to vector<8x128xf32>
    %cst_92 = arith.constant 5.000000e-01 : f32
    %226 = vector.broadcast %cst_92 : f32 to vector<8x128xf32>
    %227 = arith.mulf %226, %225 : vector<8x128xf32>
    %228 = math.tanh %227 : vector<8x128xf32>
    %cst_93 = arith.constant 1.000000e+00 : f32
    %229 = vector.broadcast %cst_93 : f32 to vector<8x128xf32>
    %230 = arith.addf %229, %228 : vector<8x128xf32>
    %cst_94 = arith.constant 5.000000e-01 : f32
    %231 = vector.broadcast %cst_94 : f32 to vector<8x128xf32>
    %232 = arith.mulf %231, %230 : vector<8x128xf32>
    %233 = vector.extract_strided_slice %224 {offsets = [0, 128], sizes = [8, 128], strides = [1, 1]} : vector<8x512xf32> to vector<8x128xf32>
    %cst_95 = arith.constant 5.000000e-01 : f32
    %234 = vector.broadcast %cst_95 : f32 to vector<8x128xf32>
    %235 = arith.mulf %234, %233 : vector<8x128xf32>
    %236 = math.tanh %235 : vector<8x128xf32>
    %cst_96 = arith.constant 1.000000e+00 : f32
    %237 = vector.broadcast %cst_96 : f32 to vector<8x128xf32>
    %238 = arith.addf %237, %236 : vector<8x128xf32>
    %cst_97 = arith.constant 5.000000e-01 : f32
    %239 = vector.broadcast %cst_97 : f32 to vector<8x128xf32>
    %240 = arith.mulf %239, %238 : vector<8x128xf32>
    %241 = vector.extract_strided_slice %224 {offsets = [0, 256], sizes = [8, 128], strides = [1, 1]} : vector<8x512xf32> to vector<8x128xf32>
    %242 = math.tanh %241 : vector<8x128xf32>
    %243 = vector.extract_strided_slice %224 {offsets = [0, 384], sizes = [8, 128], strides = [1, 1]} : vector<8x512xf32> to vector<8x128xf32>
    %cst_98 = arith.constant 5.000000e-01 : f32
    %244 = vector.broadcast %cst_98 : f32 to vector<8x128xf32>
    %245 = arith.mulf %244, %243 : vector<8x128xf32>
    %246 = math.tanh %245 : vector<8x128xf32>
    %cst_99 = arith.constant 1.000000e+00 : f32
    %247 = vector.broadcast %cst_99 : f32 to vector<8x128xf32>
    %248 = arith.addf %247, %246 : vector<8x128xf32>
    %cst_100 = arith.constant 5.000000e-01 : f32
    %249 = vector.broadcast %cst_100 : f32 to vector<8x128xf32>
    %250 = arith.mulf %249, %248 : vector<8x128xf32>
    %251 = arith.mulf %240, %212 : vector<8x128xf32>
    %252 = arith.mulf %232, %242 : vector<8x128xf32>
    %253 = arith.addf %251, %252 : vector<8x128xf32>
    %254 = math.tanh %253 : vector<8x128xf32>
    %255 = arith.mulf %250, %254 : vector<8x128xf32>
    %256 = arith.index_cast %218 : i32 to index
    %c0_101 = arith.constant 0 : index
    %257 = vector.load %arg11[%256, %c0_101] : memref<64x128xf32, #tpu.memory_space<vmem>>, vector<8x128xf32>
    tpu.vector_store %arg11[%256, %c0_101], %255 {strides = array<i32>} : memref<64x128xf32, #tpu.memory_space<vmem>>, vector<8x128xf32>,
    %c6_i32 = arith.constant 6 : i32
    %c8_i32_102 = arith.constant 8 : i32
    %258 = arith.muli %c6_i32, %c8_i32_102 : i32
    %259 = tpu.assume_multiple %258, 8 : i32
    %260 = arith.index_cast %259 : i32 to index
    %c0_103 = arith.constant 0 : index
    %261 = vector.load %arg10[%260, %c0_103] : memref<64x512xf32, #tpu.memory_space<vmem>>, vector<8x512xf32>
    %262 = arith.truncf %255 : vector<8x128xf32> to vector<8x128xbf16>
    %c0_104 = arith.constant 0 : index
    %c0_105 = arith.constant 0 : index
    %263 = vector.load %arg4[%c0_104, %c0_105] : memref<128x512xbf16, #tpu.memory_space<vmem>>, vector<128x512xbf16>
    %cst_106 = arith.constant dense<0.000000e+00> : vector<8x512xf32>
    %264 = tpu.matmul %262, %263, %cst_106 {dimension_numbers = #tpu.dot_dimension_numbers<[1], [0], [0], [1], [0, 0, 1, 1], [], []>} : vector<8x128xbf16>, vector<128x512xbf16>, vector<8x512xf32> -> vector<8x512xf32>
    %265 = arith.addf %261, %264 : vector<8x512xf32>
    %266 = vector.extract_strided_slice %265 {offsets = [0, 0], sizes = [8, 128], strides = [1, 1]} : vector<8x512xf32> to vector<8x128xf32>
    %cst_107 = arith.constant 5.000000e-01 : f32
    %267 = vector.broadcast %cst_107 : f32 to vector<8x128xf32>
    %268 = arith.mulf %267, %266 : vector<8x128xf32>
    %269 = math.tanh %268 : vector<8x128xf32>
    %cst_108 = arith.constant 1.000000e+00 : f32
    %270 = vector.broadcast %cst_108 : f32 to vector<8x128xf32>
    %271 = arith.addf %270, %269 : vector<8x128xf32>
    %cst_109 = arith.constant 5.000000e-01 : f32
    %272 = vector.broadcast %cst_109 : f32 to vector<8x128xf32>
    %273 = arith.mulf %272, %271 : vector<8x128xf32>
    %274 = vector.extract_strided_slice %265 {offsets = [0, 128], sizes = [8, 128], strides = [1, 1]} : vector<8x512xf32> to vector<8x128xf32>
    %cst_110 = arith.constant 5.000000e-01 : f32
    %275 = vector.broadcast %cst_110 : f32 to vector<8x128xf32>
    %276 = arith.mulf %275, %274 : vector<8x128xf32>
    %277 = math.tanh %276 : vector<8x128xf32>
    %cst_111 = arith.constant 1.000000e+00 : f32
    %278 = vector.broadcast %cst_111 : f32 to vector<8x128xf32>
    %279 = arith.addf %278, %277 : vector<8x128xf32>
    %cst_112 = arith.constant 5.000000e-01 : f32
    %280 = vector.broadcast %cst_112 : f32 to vector<8x128xf32>
    %281 = arith.mulf %280, %279 : vector<8x128xf32>
    %282 = vector.extract_strided_slice %265 {offsets = [0, 256], sizes = [8, 128], strides = [1, 1]} : vector<8x512xf32> to vector<8x128xf32>
    %283 = math.tanh %282 : vector<8x128xf32>
    %284 = vector.extract_strided_slice %265 {offsets = [0, 384], sizes = [8, 128], strides = [1, 1]} : vector<8x512xf32> to vector<8x128xf32>
    %cst_113 = arith.constant 5.000000e-01 : f32
    %285 = vector.broadcast %cst_113 : f32 to vector<8x128xf32>
    %286 = arith.mulf %285, %284 : vector<8x128xf32>
    %287 = math.tanh %286 : vector<8x128xf32>
    %cst_114 = arith.constant 1.000000e+00 : f32
    %288 = vector.broadcast %cst_114 : f32 to vector<8x128xf32>
    %289 = arith.addf %288, %287 : vector<8x128xf32>
    %cst_115 = arith.constant 5.000000e-01 : f32
    %290 = vector.broadcast %cst_115 : f32 to vector<8x128xf32>
    %291 = arith.mulf %290, %289 : vector<8x128xf32>
    %292 = arith.mulf %281, %253 : vector<8x128xf32>
    %293 = arith.mulf %273, %283 : vector<8x128xf32>
    %294 = arith.addf %292, %293 : vector<8x128xf32>
    %295 = math.tanh %294 : vector<8x128xf32>
    %296 = arith.mulf %291, %295 : vector<8x128xf32>
    %297 = arith.index_cast %259 : i32 to index
    %c0_116 = arith.constant 0 : index
    %298 = vector.load %arg11[%297, %c0_116] : memref<64x128xf32, #tpu.memory_space<vmem>>, vector<8x128xf32>
    tpu.vector_store %arg11[%297, %c0_116], %296 {strides = array<i32>} : memref<64x128xf32, #tpu.memory_space<vmem>>, vector<8x128xf32>,
    %c7_i32 = arith.constant 7 : i32
    %c8_i32_117 = arith.constant 8 : i32
    %299 = arith.muli %c7_i32, %c8_i32_117 : i32
    %300 = tpu.assume_multiple %299, 8 : i32
    %301 = arith.index_cast %300 : i32 to index
    %c0_118 = arith.constant 0 : index
    %302 = vector.load %arg10[%301, %c0_118] : memref<64x512xf32, #tpu.memory_space<vmem>>, vector<8x512xf32>
    %303 = arith.truncf %296 : vector<8x128xf32> to vector<8x128xbf16>
    %c0_119 = arith.constant 0 : index
    %c0_120 = arith.constant 0 : index
    %304 = vector.load %arg4[%c0_119, %c0_120] : memref<128x512xbf16, #tpu.memory_space<vmem>>, vector<128x512xbf16>
    %cst_121 = arith.constant dense<0.000000e+00> : vector<8x512xf32>
    %305 = tpu.matmul %303, %304, %cst_121 {dimension_numbers = #tpu.dot_dimension_numbers<[1], [0], [0], [1], [0, 0, 1, 1], [], []>} : vector<8x128xbf16>, vector<128x512xbf16>, vector<8x512xf32> -> vector<8x512xf32>
    %306 = arith.addf %302, %305 : vector<8x512xf32>
    %307 = vector.extract_strided_slice %306 {offsets = [0, 0], sizes = [8, 128], strides = [1, 1]} : vector<8x512xf32> to vector<8x128xf32>
    %cst_122 = arith.constant 5.000000e-01 : f32
    %308 = vector.broadcast %cst_122 : f32 to vector<8x128xf32>
    %309 = arith.mulf %308, %307 : vector<8x128xf32>
    %310 = math.tanh %309 : vector<8x128xf32>
    %cst_123 = arith.constant 1.000000e+00 : f32
    %311 = vector.broadcast %cst_123 : f32 to vector<8x128xf32>
    %312 = arith.addf %311, %310 : vector<8x128xf32>
    %cst_124 = arith.constant 5.000000e-01 : f32
    %313 = vector.broadcast %cst_124 : f32 to vector<8x128xf32>
    %314 = arith.mulf %313, %312 : vector<8x128xf32>
    %315 = vector.extract_strided_slice %306 {offsets = [0, 128], sizes = [8, 128], strides = [1, 1]} : vector<8x512xf32> to vector<8x128xf32>
    %cst_125 = arith.constant 5.000000e-01 : f32
    %316 = vector.broadcast %cst_125 : f32 to vector<8x128xf32>
    %317 = arith.mulf %316, %315 : vector<8x128xf32>
    %318 = math.tanh %317 : vector<8x128xf32>
    %cst_126 = arith.constant 1.000000e+00 : f32
    %319 = vector.broadcast %cst_126 : f32 to vector<8x128xf32>
    %320 = arith.addf %319, %318 : vector<8x128xf32>
    %cst_127 = arith.constant 5.000000e-01 : f32
    %321 = vector.broadcast %cst_127 : f32 to vector<8x128xf32>
    %322 = arith.mulf %321, %320 : vector<8x128xf32>
    %323 = vector.extract_strided_slice %306 {offsets = [0, 256], sizes = [8, 128], strides = [1, 1]} : vector<8x512xf32> to vector<8x128xf32>
    %324 = math.tanh %323 : vector<8x128xf32>
    %325 = vector.extract_strided_slice %306 {offsets = [0, 384], sizes = [8, 128], strides = [1, 1]} : vector<8x512xf32> to vector<8x128xf32>
    %cst_128 = arith.constant 5.000000e-01 : f32
    %326 = vector.broadcast %cst_128 : f32 to vector<8x128xf32>
    %327 = arith.mulf %326, %325 : vector<8x128xf32>
    %328 = math.tanh %327 : vector<8x128xf32>
    %cst_129 = arith.constant 1.000000e+00 : f32
    %329 = vector.broadcast %cst_129 : f32 to vector<8x128xf32>
    %330 = arith.addf %329, %328 : vector<8x128xf32>
    %cst_130 = arith.constant 5.000000e-01 : f32
    %331 = vector.broadcast %cst_130 : f32 to vector<8x128xf32>
    %332 = arith.mulf %331, %330 : vector<8x128xf32>
    %333 = arith.mulf %322, %294 : vector<8x128xf32>
    %334 = arith.mulf %314, %324 : vector<8x128xf32>
    %335 = arith.addf %333, %334 : vector<8x128xf32>
    %336 = math.tanh %335 : vector<8x128xf32>
    %337 = arith.mulf %332, %336 : vector<8x128xf32>
    %338 = arith.index_cast %300 : i32 to index
    %c0_131 = arith.constant 0 : index
    %339 = vector.load %arg11[%338, %c0_131] : memref<64x128xf32, #tpu.memory_space<vmem>>, vector<8x128xf32>
    tpu.vector_store %arg11[%338, %c0_131], %337 {strides = array<i32>} : memref<64x128xf32, #tpu.memory_space<vmem>>, vector<8x128xf32>,
    %c8_i32_132 = arith.constant 8 : i32
    %c0_133 = arith.constant 0 : index
    %c0_134 = arith.constant 0 : index
    %340 = vector.load %arg12[%c0_133, %c0_134] : memref<8x128xf32, #tpu.memory_space<vmem>>, vector<8x128xf32>
    tpu.vector_store %arg12[%c0_133, %c0_134], %337 {strides = array<i32>} : memref<8x128xf32, #tpu.memory_space<vmem>>, vector<8x128xf32>,
    %c0_135 = arith.constant 0 : index
    %c0_136 = arith.constant 0 : index
    %341 = vector.load %arg13[%c0_135, %c0_136] : memref<8x128xf32, #tpu.memory_space<vmem>>, vector<8x128xf32>
    tpu.vector_store %arg13[%c0_135, %c0_136], %335 {strides = array<i32>} : memref<8x128xf32, #tpu.memory_space<vmem>>, vector<8x128xf32>,
    %c0_137 = arith.constant 0 : index
    %c0_138 = arith.constant 0 : index
    %342 = vector.load %arg11[%c0_137, %c0_138] : memref<64x128xf32, #tpu.memory_space<vmem>>, vector<64x128xf32>
    %343 = arith.truncf %342 : vector<64x128xf32> to vector<64x128xbf16>
    %c0_139 = arith.constant 0 : index
    %c0_140 = arith.constant 0 : index
    %344 = vector.load %arg7[%c0_139, %c0_140] : memref<64x128xbf16, #tpu.memory_space<vmem>>, vector<64x128xbf16>
    tpu.vector_store %arg7[%c0_139, %c0_140], %343 {strides = array<i32>} : memref<64x128xbf16, #tpu.memory_space<vmem>>, vector<64x128xbf16>,
    %c0_i32_141 = arith.constant 0 : i32
    %345 = arith.cmpi eq, %arg0, %c0_i32_141 : i32
    %346 = arith.extui %345 : i1 to i32
    %c0_i32_142 = arith.constant 0 : i32
    %347 = arith.cmpi ne, %346, %c0_i32_142 : i32
    scf.if %347 {
      %c0_143 = arith.constant 0 : index
      %c0_144 = arith.constant 0 : index
      %348 = vector.load %arg8[%c0_143, %c0_144] : memref<8x128xf32, #tpu.memory_space<vmem>>, vector<8x128xf32>
      tpu.vector_store %arg8[%c0_143, %c0_144], %337 {strides = array<i32>} : memref<8x128xf32, #tpu.memory_space<vmem>>, vector<8x128xf32>,
      %c0_145 = arith.constant 0 : index
      %c0_146 = arith.constant 0 : index
      %349 = vector.load %arg9[%c0_145, %c0_146] : memref<8x128xf32, #tpu.memory_space<vmem>>, vector<8x128xf32>
      tpu.vector_store %arg9[%c0_145, %c0_146], %335 {strides = array<i32>} : memref<8x128xf32, #tpu.memory_space<vmem>>, vector<8x128xf32>,
    } else {
    }
    return
  }
  func.func @transform_0(%arg0: i32) -> (i32, i32) {
    %c0_i32 = arith.constant 0 : i32
    %c0_i32_0 = arith.constant 0 : i32
    return %arg0, %c0_i32 : i32, i32
  }
  func.func @transform_1(%arg0: i32) -> (i32, i32) {
    %c0_i32 = arith.constant 0 : i32
    %c0_i32_0 = arith.constant 0 : i32
    %c0_i32_1 = arith.constant 0 : i32
    return %c0_i32, %c0_i32_0 : i32, i32
  }
  func.func @transform_2(%arg0: i32) -> (i32, i32) {
    %c0_i32 = arith.constant 0 : i32
    %c0_i32_0 = arith.constant 0 : i32
    %c0_i32_1 = arith.constant 0 : i32
    return %c0_i32, %c0_i32_0 : i32, i32
  }
  func.func @transform_3(%arg0: i32) -> (i32, i32) {
    %c0_i32 = arith.constant 0 : i32
    %c0_i32_0 = arith.constant 0 : i32
    %c0_i32_1 = arith.constant 0 : i32
    return %c0_i32, %c0_i32_0 : i32, i32
  }
  func.func @transform_4(%arg0: i32) -> (i32, i32) {
    %c0_i32 = arith.constant 0 : i32
    %c0_i32_0 = arith.constant 0 : i32
    %c0_i32_1 = arith.constant 0 : i32
    return %c0_i32, %c0_i32_0 : i32, i32
  }
  func.func @transform_5(%arg0: i32) -> (i32, i32) {
    %c0_i32 = arith.constant 0 : i32
    %c0_i32_0 = arith.constant 0 : i32
    %c0_i32_1 = arith.constant 0 : i32
    return %c0_i32, %c0_i32_0 : i32, i32
  }
  func.func @transform_6(%arg0: i32) -> (i32, i32) {
    %c0_i32 = arith.constant 0 : i32
    %c0_i32_0 = arith.constant 0 : i32
    return %arg0, %c0_i32 : i32, i32
  }
  func.func @transform_7(%arg0: i32) -> (i32, i32) {
    %c0_i32 = arith.constant 0 : i32
    %c0_i32_0 = arith.constant 0 : i32
    %c0_i32_1 = arith.constant 0 : i32
    return %c0_i32, %c0_i32_0 : i32, i32
  }
  func.func @transform_8(%arg0: i32) -> (i32, i32) {
    %c0_i32 = arith.constant 0 : i32
    %c0_i32_0 = arith.constant 0 : i32
    %c0_i32_1 = arith.constant 0 : i32
    return %c0_i32, %c0_i32_0 : i32, i32
  }
}

</mosaic_0001>

<bundles_post_ra>
// kernel: tpu_custom_call.1
= control target key start
LH: loop header
LB: loop body
LE: loop exit
PB: predicated region body
PF: predicated region fallthrough
CT: control target
= control target key end

     0   :  { %14 = vsyncpa [#allocation7], 0  ;;  %s4548_s0 = inlined_call_operand.hbm [shape: bf16[64,128], index: 0, kind: input, shape index: {}]   ;;  %s4549_s1 = inlined_call_operand.hbm [shape: bf16[128,512], index: 1, kind: input, shape index: {}]   ;;  %s4550_s2 = inlined_call_operand.hbm [shape: f32[1,512], index: 2, kind: input, shape index: {}]   ;;  %s4551_s3 = inlined_call_operand.hbm [shape: bf16[128,512], index: 3, kind: input, shape index: {}]   ;;  %s4552_s4 = inlined_call_operand.vmem [shape: f32[8,128], index: 4, kind: input, shape index: {}]   ;;  %s4553_s5 = inlined_call_operand.vmem [shape: f32[8,128], index: 5, kind: input, shape index: {}]   ;;  %s4554_s6 = inlined_call_operand.hbm [shape: bf16[64,128], index: 6, kind: output, shape index: {0}]   ;;  %s4555_s7 = inlined_call_operand.hbm [shape: f32[8,128], index: 7, kind: output, shape index: {1}]   ;;  %s4556_s8 = inlined_call_operand.hbm [shape: f32[8,128], index: 8, kind: output, shape index: {2}]  }
   0x1   :  { %15 = vsyncpa [#allocation10], 0 }
   0x2   :  { %16 = vsyncpa [#allocation13], 0 }
   0x3   :  { %17 = vsyncpa [#allocation8], 0 }
   0x4   :  { %18 = vsyncpa [#allocation16], 0  ;;  %s3806_s27 = smov [#allocation9]   ;;  %s3642_s9 = scalar_lea.hbm %s4549_s1, 4096 }
   0x5   :  { %s36_s28 = sshll.u32 %s3806_s27, 4  ;;  %p3643_p0 = scmp.ne.s32.totalorder %s4549_s1, %s3642_s9  ;;  %s37_s28 = int_to_ptr.vmem [resolvable:$true] %s36_s28 }
   0x6   :  { %p3646_p1 = scmp.lt.u32.totalorder %s3642_s9, %s4549_s1 }
   0x8   :  { %p3648_p2 = pnand %p3646_p1, %p3643_p0 }
   0xa   :  { %3651 = shalt.err (!%p3648_p2)
}
   0xb   :  { %s3652_s14 = scalar_lea.vmem %s37_s28, 4096  ;;  %p3657_p4 = scmp.lt.s32.totalorder %s37_s28, %s37_s28 }
   0xc   :  { %p3653_p3 = scmp.ne.s32.totalorder %s37_s28, %s3652_s14  ;;  %p3658_p5 = scmp.lt.s32.totalorder %s3652_s14, %s3652_s14 }
   0xe   :  { %p3659_p6 = por %p3658_p5, %p3657_p4 }
  0x10   :  { %p3660_p7 = pnand %p3659_p6, %p3653_p3 }
  0x12   :  { %3663 = shalt.err (!%p3660_p7)
}
  0x13   :  { %s3807_s15 = smov 256   ;;  %s3808_s16 = smov 16  }
  0x14   :  { %42 = dma.hbm_to_vmem [thread:$0]  %s4549_s1, 4096, %s37_s28, [#allocation10], %s3807_s15, %s3807_s15, %s3808_s16  }
  0x15   :  { %s3809_s19 = smov [#allocation6]   ;;  %s3664_s23 = scalar_lea.hbm %s4548_s0, 512 }
  0x16   :  { %s24_s20 = sshll.u32 %s3809_s19, 4  ;;  %p3665_p8 = scmp.ne.s32.totalorder %s4548_s0, %s3664_s23  ;;  %s25_s20 = int_to_ptr.vmem [resolvable:$true] %s24_s20 }
  0x17   :  { %p3668_p9 = scmp.lt.u32.totalorder %s3664_s23, %s4548_s0 }
  0x19   :  { %p3670_p10 = pnand %p3668_p9, %p3665_p8 }
  0x1b   :  { %3673 = shalt.err (!%p3670_p10)
}
  0x1c   :  { %s3674_s29 = scalar_lea.vmem %s25_s20, 512  ;;  %p3679_p12 = scmp.lt.s32.totalorder %s25_s20, %s25_s20 }
  0x1d   :  { %p3675_p11 = scmp.ne.s32.totalorder %s25_s20, %s3674_s29  ;;  %p3680_p13 = scmp.lt.s32.totalorder %s3674_s29, %s3674_s29 }
  0x1f   :  { %p3681_p0 = por %p3680_p13, %p3679_p12 }
  0x21   :  { %p3682_p1 = pnand %p3681_p0, %p3675_p11 }
  0x23   :  { %3685 = shalt.err (!%p3682_p1)
}
  0x24   :  { %s3810_s1 = smov 64   ;;  %s3811_s28 = smov 4  }
  0x25   :  { %30 = dma.hbm_to_vmem [thread:$0]  %s4548_s0, 512, %s25_s20, [#allocation7], %s3810_s1, %s3810_s1, %s3811_s28  }
  0x26   :  { %s3812_s10 = smov [#allocation11]   ;;  %s3813_s12 = smov [#allocation12]  }
  0x27   :  { %s49_s11 = sshll.u32 %s3812_s10, 4  ;;  %s58_s13 = sshll.u32 %s3813_s12, 4  ;;  %s50_s11 = int_to_ptr.vmem [resolvable:$true] %s49_s11  ;;  %s3893_s13 = int_to_ptr.vmem [resolvable:$true] %s58_s13 }
  0x28   :  { %s3686_s18 = scalar_lea.hbm %s4550_s2, 64 }
  0x29   :  { %p3687_p2 = scmp.ne.s32.totalorder %s4550_s2, %s3686_s18  ;;  %p3690_p3 = scmp.lt.u32.totalorder %s3686_s18, %s4550_s2 }
  0x2b   :  { %p3692_p4 = pnand %p3690_p3, %p3687_p2 }
  0x2d   :  { %3695 = shalt.err (!%p3692_p4)
}
  0x2e   :  { %s3696_s0 = scalar_lea.vmem %s50_s11, 64  ;;  %p3701_p6 = scmp.lt.s32.totalorder %s50_s11, %s50_s11 }
  0x2f   :  { %p3697_p5 = scmp.ne.s32.totalorder %s50_s11, %s3696_s0  ;;  %p3702_p7 = scmp.lt.s32.totalorder %s3696_s0, %s3696_s0 }
  0x31   :  { %p3703_p8 = por %p3702_p7, %p3701_p6 }
  0x33   :  { %p3704_p9 = pnand %p3703_p8, %p3697_p5 }
  0x35   :  { %3707 = shalt.err (!%p3704_p9)
}
  0x36   :  { %52 = dma.hbm_to_vmem [thread:$0]  %s4550_s2, 64, %s50_s11, [#allocation10]  }
  0x37   :  { %s3708_s27 = scalar_lea.hbm %s4551_s3, 4096 }
  0x38   :  { %p3709_p10 = scmp.ne.s32.totalorder %s4551_s3, %s3708_s27  ;;  %p3712_p11 = scmp.lt.u32.totalorder %s3708_s27, %s4551_s3 }
  0x3a   :  { %p3714_p12 = pnand %p3712_p11, %p3709_p10 }
  0x3c   :  { %3717 = shalt.err (!%p3714_p12)
}
  0x3d   :  { %s3718_s12 = scalar_lea.vmem %s3893_s13, 4096  ;;  %p3723_p0 = scmp.lt.s32.totalorder %s3893_s13, %s3893_s13 }
  0x3e   :  { %p3719_p13 = scmp.ne.s32.totalorder %s3893_s13, %s3718_s12  ;;  %p3724_p1 = scmp.lt.s32.totalorder %s3718_s12, %s3718_s12 }
  0x40   :  { %p3725_p2 = por %p3724_p1, %p3723_p0 }
  0x42   :  { %p3726_p3 = pnand %p3725_p2, %p3719_p13 }
  0x44   :  { %3729 = shalt.err (!%p3726_p3)
}
  0x45   :  { %64 = dma.hbm_to_vmem [thread:$0]  %s4551_s3, 4096, %s3893_s13, [#allocation13], %s3807_s15, %s3807_s15, %s3808_s16  }
  0x46   :  { %3796 = dma.done.wait [#allocation7], 512  }
  0x47   :  { %3797 = vsyncadd [#allocation7], 4294966784 }
  0x48   :  { %3798 = dma.done.wait [#allocation10], 4160  }
  0x49   :  { %3799 = vsyncadd [#allocation10], 4294963136 }
  0x4a   :  { %3800 = dma.done.wait [#allocation13], 4096  }
  0x4b   :  { %3801 = vsyncadd [#allocation13], 4294963200  ;;  %v4557_v0 = vmov 0   ;;  %v3414_v1 = vld [vmem:[#allocation9 + $0x4] ss:$16 sps:$4 sm:$0xff]   ;;  %v3475_v44 = vld [vmem:[#allocation6 + $0x8] sm:$0xff]  }
  0x4c   :  { %368 = vmatprep.mubr.bf16.mxu0 %v4557_v0  ;;  %441 = vmatprep.mubr.bf16.mxu1 %v4557_v0  ;;  %v3416_v2 = vld [vmem:[#allocation9 + $0xc] ss:$16 sps:$4 sm:$0xff]   ;;  %v3418_v3 = vld [vmem:[#allocation9] ss:$16 sps:$4 sm:$0xff]   ;;  %v3419_v4 = vld [vmem:[#allocation9 + $0x8] ss:$16 sps:$4 sm:$0xff]  }
  0x4d   :  { %336 = vmatprep.subr.bf16.mxu0 %v3414_v1  ;;  %409 = vmatprep.subr.bf16.mxu1 %v3416_v2  ;;  %v3420_v5 = vld [vmem:[#allocation9 + $0x24] ss:$16 sps:$4 sm:$0xff]   ;;  %v3422_v6 = vld [vmem:[#allocation9 + $0x2c] ss:$16 sps:$4 sm:$0xff]   ;;  %v3424_v7 = vld [vmem:[#allocation9 + $0x20] ss:$16 sps:$4 sm:$0xff]  }
  0x4e   :  { %337 = vmatpush1.bf16.msra.mxu0 %v3418_v3  ;;  %410 = vmatpush1.bf16.msra.mxu1 %v3419_v4  ;;  %v3425_v8 = vld [vmem:[#allocation9 + $0x28] ss:$16 sps:$4 sm:$0xff]   ;;  %v3426_v9 = vld [vmem:[#allocation9 + $0x44] ss:$16 sps:$4 sm:$0xff]   ;;  %v3428_v10 = vld [vmem:[#allocation9 + $0x4c] ss:$16 sps:$4 sm:$0xff]  }
  0x4f   :  { %338 = vmatprep.subr.bf16.mxu0 %v3420_v5  ;;  %411 = vmatprep.subr.bf16.mxu1 %v3422_v6  ;;  %v3430_v11 = vld [vmem:[#allocation9 + $0x40] ss:$16 sps:$4 sm:$0xff]   ;;  %v3431_v12 = vld [vmem:[#allocation9 + $0x48] ss:$16 sps:$4 sm:$0xff]   ;;  %v3432_v13 = vld [vmem:[#allocation9 + $0x64] ss:$16 sps:$4 sm:$0xff]  }
  0x50   :  { %v3434_v14 = vld [vmem:[#allocation9 + $0x6c] ss:$16 sps:$4 sm:$0xff]   ;;  %v3436_v15 = vld [vmem:[#allocation9 + $0x60] ss:$16 sps:$4 sm:$0xff]   ;;  %v3437_v16 = vld [vmem:[#allocation9 + $0x68] ss:$16 sps:$4 sm:$0xff]  }
  0x51   :  { %v3438_v17 = vld [vmem:[#allocation9 + $0x84] ss:$16 sps:$4 sm:$0xff]   ;;  %v3440_v18 = vld [vmem:[#allocation9 + $0x8c] ss:$16 sps:$4 sm:$0xff]   ;;  %v3442_v19 = vld [vmem:[#allocation9 + $0x80] ss:$16 sps:$4 sm:$0xff]  }
  0x52   :  { %339 = vmatpush1.bf16.msra.mxu0 %v3424_v7  ;;  %412 = vmatpush1.bf16.msra.mxu1 %v3425_v8  ;;  %v3443_v20 = vld [vmem:[#allocation9 + $0x88] ss:$16 sps:$4 sm:$0xff]   ;;  %v3444_v21 = vld [vmem:[#allocation9 + $0xa4] ss:$16 sps:$4 sm:$0xff]   ;;  %v3446_v22 = vld [vmem:[#allocation9 + $0xac] ss:$16 sps:$4 sm:$0xff]   ;;  %v132_v8 = vlaneseq }
  0x53   :  { %340 = vmatprep.subr.bf16.mxu0 %v3426_v9  ;;  %413 = vmatprep.subr.bf16.mxu1 %v3428_v10  ;;  %v3448_v23 = vld [vmem:[#allocation9 + $0xa0] ss:$16 sps:$4 sm:$0xff]   ;;  %v3449_v24 = vld [vmem:[#allocation9 + $0xa8] ss:$16 sps:$4 sm:$0xff]   ;;  %v3450_v25 = vld [vmem:[#allocation9 + $0xc4] ss:$16 sps:$4 sm:$0xff]  }
  0x54   :  { %v3452_v26 = vld [vmem:[#allocation9 + $0xcc] ss:$16 sps:$4 sm:$0xff]   ;;  %v3454_v27 = vld [vmem:[#allocation9 + $0xc0] ss:$16 sps:$4 sm:$0xff]   ;;  %v3455_v28 = vld [vmem:[#allocation9 + $0xc8] ss:$16 sps:$4 sm:$0xff]  }
  0x55   :  { %v3456_v29 = vld [vmem:[#allocation9 + $0xe4] ss:$16 sps:$4 sm:$0xff]   ;;  %v3458_v30 = vld [vmem:[#allocation9 + $0xec] ss:$16 sps:$4 sm:$0xff]   ;;  %v3460_v31 = vld [vmem:[#allocation9 + $0xe0] ss:$16 sps:$4 sm:$0xff]  }
  0x56   :  { %341 = vmatpush1.bf16.msra.mxu0 %v3430_v11  ;;  %414 = vmatpush1.bf16.msra.mxu1 %v3431_v12  ;;  %v3461_v32 = vld [vmem:[#allocation9 + $0xe8] ss:$16 sps:$4 sm:$0xff]   ;;  %v3931_v34 = vld [vmem:[#allocation12 + $0xc] ss:$16 sps:$4 sm:$0xff]   ;;  %v3933_v36 = vld [vmem:[#allocation12] ss:$16 sps:$4 sm:$0xff]  }
  0x57   :  { %342 = vmatprep.subr.bf16.mxu0 %v3432_v13  ;;  %415 = vmatprep.subr.bf16.mxu1 %v3434_v14  ;;  %v3929_v33 = vld [vmem:[#allocation12 + $0x4] ss:$16 sps:$4 sm:$0xff]   ;;  %v3462_v35 = vld [vmem:[#allocation6] sm:$0xff]   ;;  %v3935_v37 = vld [vmem:[#allocation12 + $0x8] ss:$16 sps:$4 sm:$0xff]   ;;  %v133_v9 = vshrl.u32 %v132_v8, 7 }
  0x58   :  { %v3939_v38 = vld [vmem:[#allocation12 + $0x24] ss:$16 sps:$4 sm:$0xff]   ;;  %v3941_v39 = vld [vmem:[#allocation12 + $0x2c] ss:$16 sps:$4 sm:$0xff]   ;;  %v3943_v40 = vld [vmem:[#allocation12 + $0x20] ss:$16 sps:$4 sm:$0xff]  }
  0x59   :  { %v3947_v41 = vld [vmem:[#allocation12 + $0x28] ss:$16 sps:$4 sm:$0xff]   ;;  %v3951_v42 = vld [vmem:[#allocation12 + $0x44] ss:$16 sps:$4 sm:$0xff]   ;;  %v3953_v43 = vld [vmem:[#allocation12 + $0x4c] ss:$16 sps:$4 sm:$0xff]  }
  0x5a   :  { %343 = vmatpush1.bf16.msra.mxu0 %v3436_v15  ;;  %416 = vmatpush1.bf16.msra.mxu1 %v3437_v16  ;;  %v3957_v45 = vld [vmem:[#allocation12 + $0x40] ss:$16 sps:$4 sm:$0xff]   ;;  %v3959_v46 = vld [vmem:[#allocation12 + $0x48] ss:$16 sps:$4 sm:$0xff]   ;;  %v3963_v47 = vld [vmem:[#allocation12 + $0x64] ss:$16 sps:$4 sm:$0xff]  }
  0x5b   :  { %344 = vmatprep.subr.bf16.mxu0 %v3438_v17  ;;  %417 = vmatprep.subr.bf16.mxu1 %v3440_v18  ;;  %v3967_v48 = vld [vmem:[#allocation12 + $0x6c] ss:$16 sps:$4 sm:$0xff]   ;;  %v3969_v49 = vld [vmem:[#allocation12 + $0x60] ss:$16 sps:$4 sm:$0xff]   ;;  %v3971_v50 = vld [vmem:[#allocation12 + $0x68] ss:$16 sps:$4 sm:$0xff]  }
  0x5c   :  { %v3975_v51 = vld [vmem:[#allocation12 + $0x84] ss:$16 sps:$4 sm:$0xff]   ;;  %v3979_v52 = vld [vmem:[#allocation12 + $0x8c] ss:$16 sps:$4 sm:$0xff]   ;;  %v3983_v54 = vld [vmem:[#allocation12 + $0x80] ss:$16 sps:$4 sm:$0xff]  }
  0x5d   :  { %v3488_v53 = vld [vmem:[#allocation6 + $0x10] sm:$0xff]   ;;  %v3985_v55 = vld [vmem:[#allocation12 + $0x88] ss:$16 sps:$4 sm:$0xff]   ;;  %v3987_v56 = vld [vmem:[#allocation12 + $0xa4] ss:$16 sps:$4 sm:$0xff]   ;;  %v142_v10 = vsub.s32 2, %v133_v9 }
  0x5e   :  { %345 = vmatpush1.bf16.msra.mxu0 %v3442_v19  ;;  %418 = vmatpush1.bf16.msra.mxu1 %v3443_v20  ;;  %v3989_v57 = vld [vmem:[#allocation12 + $0xac] ss:$16 sps:$4 sm:$0xff]   ;;  %v3995_v58 = vld [vmem:[#allocation12 + $0xa0] ss:$16 sps:$4 sm:$0xff]   ;;  %v3997_v59 = vld [vmem:[#allocation12 + $0xa8] ss:$16 sps:$4 sm:$0xff]  }
  0x5f   :  { %346 = vmatprep.subr.bf16.mxu0 %v3444_v21  ;;  %419 = vmatprep.subr.bf16.mxu1 %v3446_v22  ;;  %v3999_v60 = vld [vmem:[#allocation12 + $0xc4] ss:$16 sps:$4 sm:$0xff]   ;;  %v4001_v61 = vld [vmem:[#allocation12 + $0xcc] ss:$16 sps:$4 sm:$0xff]   ;;  %v4009_v63 = vld [vmem:[#allocation12 + $0xc0] ss:$16 sps:$4 sm:$0xff]  }
  0x60   :  { %v3501_v62 = vld [vmem:[#allocation6 + $0x18] sm:$0xff]   ;;  %v4015_v3 = vld [vmem:[#allocation12 + $0xec] ss:$16 sps:$4 sm:$0xff]   ;;  %v4023_v4 = vld [vmem:[#allocation12 + $0xe0] ss:$16 sps:$4 sm:$0xff]   ;;  %v146_v11 = vsub.s32 3, %v133_v9 }
  0x61   :  { %v4011_v1 = vld [vmem:[#allocation12 + $0xc8] ss:$16 sps:$4 sm:$0xff]   ;;  %v4013_v2 = vld [vmem:[#allocation12 + $0xe4] ss:$16 sps:$4 sm:$0xff]   ;;  %v86_v6 = vld [vmem:[%s4552_s4] sm:$0xff]  ;;  %v134_v12 = vsub.s32 0, %v133_v9 }
  0x62   :  { %347 = vmatpush1.bf16.msra.mxu0 %v3448_v23  ;;  %420 = vmatpush1.bf16.msra.mxu1 %v3449_v24  ;;  %v4025_v5 = vld [vmem:[#allocation12 + $0xe8] ss:$16 sps:$4 sm:$0xff]   ;;  %v523_v7 = vpack.c.bf16 %v86_v6, %v86_v6  ;;  %v130_v13 = vld [vmem:[#allocation11] sm:$0xf]  ;;  %v138_v14 = vsub.s32 1, %v133_v9  ;;  %s3816_s14 = smov [#allocation17]  }
  0x63   :  { %348 = vmatprep.subr.bf16.mxu0 %v3450_v25  ;;  %421 = vmatprep.subr.bf16.mxu1 %v3452_v26  ;;  %v4072_v15 = vrot.slane %v130_v13, %v142_v10  ;;  %v4078_v18 = vrot.slane %v130_v13, %v146_v11  ;;  %v135_v19 = vrot.slane %v130_v13, %v134_v12  ;;  %s3046_s17 = sshll.u32 %s3816_s14, 4  ;;  %s3817_s18 = smov [#allocation14]   ;;  %s4494_s17 = int_to_ptr.vmem [resolvable:$true] %s3046_s17 }
  0x64   :  { %v139_v22 = vrot.slane %v130_v13, %v138_v14  ;;  %s3023_s19 = sshll.u32 %s3817_s18, 4  ;;  %s4497_s19 = int_to_ptr.vmem [resolvable:$true] %s3023_s19 }
  0x66   :  { %349 = vmatpush1.bf16.msra.mxu0 %v3454_v27  ;;  %422 = vmatpush1.bf16.msra.mxu1 %v3455_v28 }
  0x67   :  { %350 = vmatprep.subr.bf16.mxu0 %v3456_v29  ;;  %423 = vmatprep.subr.bf16.mxu1 %v3458_v30 }
  0x6a   :  { %351 = vmatpush1.bf16.msra.mxu0 %v3460_v31  ;;  %424 = vmatpush1.bf16.msra.mxu1 %v3461_v32 }
  0x6b   :  { %716 = vmatprep.subr.bf16.mxu0 %v3929_v33  ;;  %757 = vmatprep.subr.bf16.mxu1 %v3931_v34 }
  0x6d   :  { %369 = vmatmul.mubr.bf16.vlgmr.msra.gmra.mrb[0].mxu0 %v3462_v35  ;;  %442 = vmatmul.mubr.bf16.vlgmr.msra.gmra.mrb[0].mxu1 %v3462_v35 }
  0x6e   :  { %717 = vmatpush1.bf16.msra.mxu0 %v3933_v36  ;;  %758 = vmatpush1.bf16.msra.mxu1 %v3935_v37 }
  0x6f   :  { %718 = vmatprep.subr.bf16.mxu0 %v3939_v38  ;;  %759 = vmatprep.subr.bf16.mxu1 %v3941_v39 }
  0x70   :  { %378 = vmatprep.mubr.bf16.mxu0 %v4557_v0  ;;  %451 = vmatprep.mubr.bf16.mxu1 %v4557_v0 }
  0x72   :  { %719 = vmatpush1.bf16.msra.mxu0 %v3943_v40  ;;  %760 = vmatpush1.bf16.msra.mxu1 %v3947_v41 }
  0x73   :  { %720 = vmatprep.subr.bf16.mxu0 %v3951_v42  ;;  %761 = vmatprep.subr.bf16.mxu1 %v3953_v43 }
  0x75   :  { %379 = vmatmul.mubr.bf16.gmra.mrb[4].mxu0 %v3475_v44  ;;  %452 = vmatmul.mubr.bf16.gmra.mrb[4].mxu1 %v3475_v44 }
  0x76   :  { %721 = vmatpush1.bf16.msra.mxu0 %v3957_v45  ;;  %762 = vmatpush1.bf16.msra.mxu1 %v3959_v46 }
  0x77   :  { %722 = vmatprep.subr.bf16.mxu0 %v3963_v47  ;;  %763 = vmatprep.subr.bf16.mxu1 %v3967_v48 }
  0x78   :  { %388 = vmatprep.mubr.bf16.mxu0 %v4557_v0  ;;  %461 = vmatprep.mubr.bf16.mxu1 %v4557_v0 }
  0x7a   :  { %723 = vmatpush1.bf16.msra.mxu0 %v3969_v49  ;;  %764 = vmatpush1.bf16.msra.mxu1 %v3971_v50 }
  0x7b   :  { %724 = vmatprep.subr.bf16.mxu0 %v3975_v51  ;;  %765 = vmatprep.subr.bf16.mxu1 %v3979_v52 }
  0x7d   :  { %389 = vmatmul.mubr.bf16.gmra.mrb[8].mxu0 %v3488_v53  ;;  %462 = vmatmul.mubr.bf16.gmra.mrb[8].mxu1 %v3488_v53 }
  0x7e   :  { %725 = vmatpush1.bf16.msra.mxu0 %v3983_v54  ;;  %766 = vmatpush1.bf16.msra.mxu1 %v3985_v55 }
  0x7f   :  { %726 = vmatprep.subr.bf16.mxu0 %v3987_v56  ;;  %767 = vmatprep.subr.bf16.mxu1 %v3989_v57 }
  0x80   :  { %398 = vmatprep.mubr.bf16.mxu0 %v4557_v0  ;;  %471 = vmatprep.mubr.bf16.mxu1 %v4557_v0 }
  0x82   :  { %727 = vmatpush1.bf16.msra.mxu0 %v3995_v58  ;;  %768 = vmatpush1.bf16.msra.mxu1 %v3997_v59 }
  0x83   :  { %728 = vmatprep.subr.bf16.mxu0 %v3999_v60  ;;  %769 = vmatprep.subr.bf16.mxu1 %v4001_v61 }
  0x85   :  { %399 = vmatmul.mubr.bf16.gmra.mrb[12].mxu0 %v3501_v62  ;;  %472 = vmatmul.mubr.bf16.gmra.mrb[12].mxu1 %v3501_v62 }
  0x86   :  { %729 = vmatpush1.bf16.msra.mxu0 %v4009_v63  ;;  %770 = vmatpush1.bf16.msra.mxu1 %v4011_v1 }
  0x87   :  { %730 = vmatprep.subr.bf16.mxu0 %v4013_v2  ;;  %771 = vmatprep.subr.bf16.mxu1 %v4015_v3 }
  0x88   :  { %748 = vmatprep.mubr.bf16.mxu0 %v4557_v0  ;;  %789 = vmatprep.mubr.bf16.mxu1 %v4557_v0 }
  0x8a   :  { %731 = vmatpush1.bf16.msra.mxu0 %v4023_v4  ;;  %772 = vmatpush1.bf16.msra.mxu1 %v4025_v5 }
  0x8b   :  { %1021 = vmatprep.subr.bf16.mxu0 %v3929_v33  ;;  %1062 = vmatprep.subr.bf16.mxu1 %v3931_v34 }
  0x8d   :  { %749 = vmatmul.mubr.bf16.vlgmr.msra.gmra.mrb[16].mxu0 %v523_v7  ;;  %790 = vmatmul.mubr.bf16.vlgmr.msra.gmra.mrb[16].mxu1 %v523_v7 }
  0x8e   :  { %1022 = vmatpush1.bf16.msra.mxu0 %v3933_v36  ;;  %1063 = vmatpush1.bf16.msra.mxu1 %v3935_v37 }
  0x8f   :  { %1023 = vmatprep.subr.bf16.mxu0 %v3939_v38  ;;  %1064 = vmatprep.subr.bf16.mxu1 %v3941_v39 }
  0x90   :  { %1053 = vmatprep.mubr.bf16.mxu0 %v4557_v0  ;;  %1094 = vmatprep.mubr.bf16.mxu1 %v4557_v0 }
  0x92   :  { %1024 = vmatpush1.bf16.msra.mxu0 %v3943_v40  ;;  %1065 = vmatpush1.bf16.msra.mxu1 %v3947_v41 }
  0x93   :  { %1025 = vmatprep.subr.bf16.mxu0 %v3951_v42  ;;  %1066 = vmatprep.subr.bf16.mxu1 %v3953_v43 }
  0x96   :  { %1026 = vmatpush1.bf16.msra.mxu0 %v3957_v45  ;;  %1067 = vmatpush1.bf16.msra.mxu1 %v3959_v46 }
  0x97   :  { %1027 = vmatprep.subr.bf16.mxu0 %v3963_v47  ;;  %1068 = vmatprep.subr.bf16.mxu1 %v3967_v48 }
  0x9a   :  { %1028 = vmatpush1.bf16.msra.mxu0 %v3969_v49  ;;  %1069 = vmatpush1.bf16.msra.mxu1 %v3971_v50 }
  0x9b   :  { %1029 = vmatprep.subr.bf16.mxu0 %v3975_v51  ;;  %1070 = vmatprep.subr.bf16.mxu1 %v3979_v52 }
  0x9e   :  { %1030 = vmatpush1.bf16.msra.mxu0 %v3983_v54  ;;  %1071 = vmatpush1.bf16.msra.mxu1 %v3985_v55 }
  0x9f   :  { %1031 = vmatprep.subr.bf16.mxu0 %v3987_v56  ;;  %1072 = vmatprep.subr.bf16.mxu1 %v3989_v57 }
  0xa2   :  { %1032 = vmatpush1.bf16.msra.mxu0 %v3995_v58  ;;  %1073 = vmatpush1.bf16.msra.mxu1 %v3997_v59 }
  0xa3   :  { %1033 = vmatprep.subr.bf16.mxu0 %v3999_v60  ;;  %1074 = vmatprep.subr.bf16.mxu1 %v4001_v61 }
  0xa6   :  { %1034 = vmatpush1.bf16.msra.mxu0 %v4009_v63  ;;  %1075 = vmatpush1.bf16.msra.mxu1 %v4011_v1 }
  0xa7   :  { %1035 = vmatprep.subr.bf16.mxu0 %v4013_v2  ;;  %1076 = vmatprep.subr.bf16.mxu1 %v4015_v3 }
  0xaa   :  { %1036 = vmatpush1.bf16.msra.mxu0 %v4023_v4  ;;  %1077 = vmatpush1.bf16.msra.mxu1 %v4025_v5 }
  0xab   :  { %1327 = vmatprep.subr.bf16.mxu0 %v3929_v33  ;;  %1368 = vmatprep.subr.bf16.mxu1 %v3931_v34 }
 0x140   :  { %v4074_v16 = vpop.f32.mrb[0].mxu0  ;;  %v4076_v17 = vpop.f32.mrb[0].mxu1 }
 0x141   :  { %v372_v20 = vpop.f32.mrb[1].mxu0  ;;  %v445_v21 = vpop.f32.mrb[1].mxu1 }
 0x142   :  { %v374_v23 = vpop.f32.mrb[2].mxu0  ;;  %v447_v24 = vpop.f32.mrb[2].mxu1 }
 0x143   :  { %v4080_v25 = vadd.f32 %v374_v23, %v135_v19  ;;  %v376_v26 = vpop.f32.mrb[3].mxu0  ;;  %v4083_v27 = vadd.f32 %v447_v24, %v4072_v15  ;;  %v449_v28 = vpop.f32.mrb[3].mxu1 }
 0x144   :  { %v4085_v29 = vadd.f32 %v376_v26, %v139_v22  ;;  %v4088_v30 = vadd.f32 %v449_v28, %v4078_v18 }
 0x148   :  { %v380_v31 = vpop.f32.mrb[4].mxu0  ;;  %v453_v32 = vpop.f32.mrb[4].mxu1 }
 0x149   :  { %v4090_v35 = vadd.f32 %v380_v31, %v135_v19  ;;  %v382_v44 = vpop.f32.mrb[5].mxu0  ;;  %v4093_v53 = vadd.f32 %v453_v32, %v4072_v15  ;;  %v455_v62 = vpop.f32.mrb[5].mxu1 }
 0x14a   :  { %v4095_v6 = vadd.f32 %v382_v44, %v139_v22  ;;  %v384_v7 = vpop.f32.mrb[6].mxu0  ;;  %v4098_v8 = vadd.f32 %v455_v62, %v4078_v18  ;;  %v457_v9 = vpop.f32.mrb[6].mxu1 }
 0x14b   :  { %v4100_v10 = vadd.f32 %v384_v7, %v135_v19  ;;  %v386_v11 = vpop.f32.mrb[7].mxu0  ;;  %v4103_v12 = vadd.f32 %v457_v9, %v4072_v15  ;;  %v459_v13 = vpop.f32.mrb[7].mxu1 }
 0x14c   :  { %4559 = vst [vmem:[#allocation23_spill] sm:$0xff] %v4098_v8  ;;  %v4105_v14 = vadd.f32 %v386_v11, %v139_v22  ;;  %v4108_v23 = vadd.f32 %v459_v13, %v4078_v18 }
 0x14d   :  { %4560 = vst [vmem:[#allocation24_spill] sm:$0xff] %v4100_v10  ;;  %4561 = vst [vmem:[#allocation25_spill] sm:$0xff] %v4103_v12 }
 0x14e   :  { %4562 = vst [vmem:[#allocation26_spill] sm:$0xff] %v4105_v14  ;;  %4563 = vst [vmem:[#allocation27_spill] sm:$0xff] %v4108_v23 }
 0x150   :  { %v390_v24 = vpop.f32.mrb[8].mxu0  ;;  %v463_v26 = vpop.f32.mrb[8].mxu1 }
 0x151   :  { %v4110_v28 = vadd.f32 %v390_v24, %v135_v19  ;;  %v392_v31 = vpop.f32.mrb[9].mxu0  ;;  %v4113_v32 = vadd.f32 %v463_v26, %v4072_v15  ;;  %v465_v44 = vpop.f32.mrb[9].mxu1 }
 0x152   :  { %v4115_v62 = vadd.f32 %v392_v31, %v139_v22  ;;  %v394_v7 = vpop.f32.mrb[10].mxu0  ;;  %v4118_v9 = vadd.f32 %v465_v44, %v4078_v18  ;;  %v467_v11 = vpop.f32.mrb[10].mxu1 }
 0x153   :  { %4564 = vst [vmem:[#allocation28_spill] sm:$0xff] %v4110_v28  ;;  %4565 = vst [vmem:[#allocation29_spill] sm:$0xff] %v4113_v32  ;;  %v4120_v0 = vadd.f32 %v394_v7, %v135_v19  ;;  %v396_v13 = vpop.f32.mrb[11].mxu0  ;;  %v4123_v23 = vadd.f32 %v467_v11, %v4072_v15  ;;  %v469_v24 = vpop.f32.mrb[11].mxu1 }
 0x154   :  { %4566 = vst [vmem:[#allocation30_spill] sm:$0xff] %v4115_v62  ;;  %4567 = vst [vmem:[#allocation31_spill] sm:$0xff] %v4118_v9  ;;  %v4125_v28 = vadd.f32 %v396_v13, %v139_v22  ;;  %v4128_v26 = vadd.f32 %v469_v24, %v4078_v18 }
 0x155   :  { %4568 = vst [vmem:[#allocation32_spill] sm:$0xff] %v4120_v0  ;;  %4569 = vst [vmem:[#allocation33_spill] sm:$0xff] %v4123_v23 }
 0x156   :  { %4570 = vst [vmem:[#allocation34_spill] sm:$0xff] %v4125_v28  ;;  %4571 = vst [vmem:[#allocation35_spill] sm:$0xff] %v4128_v26 }
 0x158   :  { %v400_v32 = vpop.f32.mrb[12].mxu0  ;;  %v473_v31 = vpop.f32.mrb[12].mxu1 }
 0x159   :  { %v4130_v62 = vadd.f32 %v400_v32, %v135_v19  ;;  %v402_v14 = vpop.f32.mrb[13].mxu0  ;;  %v4133_v44 = vadd.f32 %v473_v31, %v4072_v15  ;;  %v475_v7 = vpop.f32.mrb[13].mxu1 }
 0x15a   :  { %v4135_v0 = vadd.f32 %v402_v14, %v139_v22  ;;  %v404_v9 = vpop.f32.mrb[14].mxu0  ;;  %v4138_v11 = vadd.f32 %v475_v7, %v4078_v18  ;;  %v477_v13 = vpop.f32.mrb[14].mxu1  ;;  %v371_v14 = vadd.f32 %v4074_v16, %v135_v19  ;;  %v373_v7 = vadd.f32 %v372_v20, %v139_v22 }
 0x15b   :  { %4572 = vst [vmem:[#allocation36_spill] sm:$0xff] %v4130_v62  ;;  %4573 = vst [vmem:[#allocation37_spill] sm:$0xff] %v4133_v44  ;;  %v4140_v28 = vadd.f32 %v404_v9, %v135_v19  ;;  %v406_v24 = vpop.f32.mrb[15].mxu0  ;;  %v4143_v26 = vadd.f32 %v477_v13, %v4072_v15  ;;  %v479_v32 = vpop.f32.mrb[15].mxu1 }
 0x15c   :  { %4574 = vst [vmem:[#allocation38_spill] sm:$0xff] %v4135_v0  ;;  %4575 = vst [vmem:[#allocation39_spill] sm:$0xff] %v4138_v11  ;;  %v4145_v62 = vadd.f32 %v406_v24, %v139_v22  ;;  %v4148_v31 = vadd.f32 %v479_v32, %v4078_v18  ;;  %v444_v0 = vadd.f32 %v4076_v17, %v4072_v15 }
 0x15d   :  { %4576 = vst [vmem:[#allocation40_spill] sm:$0xff] %v4140_v28  ;;  %4577 = vst [vmem:[#allocation41_spill] sm:$0xff] %v4143_v26  ;;  %v446_v11 = vadd.f32 %v445_v21, %v4078_v18  ;;  %v88_v21 = vld [vmem:[%s4553_s5] sm:$0xff]  ;;  %s3815_s5 = smov [#allocation15]  }
 0x15e   :  { %4578 = vst [vmem:[#allocation42_spill] sm:$0xff] %v4145_v62  ;;  %4579 = vst [vmem:[#allocation43_spill] sm:$0xff] %v4148_v31  ;;  %s3036_s13 = sshll.u32 %s3815_s5, 4  ;;  %s3037_s13 = int_to_ptr.vmem [resolvable:$true] %s3036_s13 }
 0x15f   :  { %s3730_s21 = scalar_lea.vmem %s3037_s13, 128  ;;  %p3735_p5 = scmp.lt.s32.totalorder %s3037_s13, %s3037_s13 }
 0x160   :  { %v750_v9 = vpop.f32.mrb[16].mxu0  ;;  %v791_v28 = vpop.f32.mrb[16].mxu1  ;;  %p3731_p4 = scmp.ne.s32.totalorder %s3037_s13, %s3730_s21  ;;  %p3736_p6 = scmp.lt.s32.totalorder %s3730_s21, %s3730_s21 }
 0x161   :  { %v798_v44 = vadd.f32 %v750_v9, %v371_v14  ;;  %v800_v23 = vadd.f32 %v791_v28, %v444_v0  ;;  %v752_v13 = vpop.f32.mrb[17].mxu0  ;;  %v793_v26 = vpop.f32.mrb[17].mxu1  ;;  %v4580_v14 = vmov 0  }
 0x162   :  { %v799_v12 = vadd.f32 %v752_v13, %v373_v7  ;;  %v801_v24 = vadd.f32 %v793_v26, %v446_v11  ;;  %v754_v62 = vpop.f32.mrb[18].mxu0  ;;  %v795_v10 = vpop.f32.mrb[18].mxu1  ;;  %p3737_p7 = por %p3736_p6, %p3735_p5 }
 0x163   :  { %v802_v32 = vmul.f32 0.5, %v798_v44  ;;  %v755_v31 = vpop.f32.mrb[19].mxu0  ;;  %v796_v8 = vpop.f32.mrb[19].mxu1 }
 0x164   :  { %v806_v16 = vmul.f32 0.5, %v799_v12  ;;  %v811_v15 = vmul.f32 0.5, %v801_v24  ;;  %p3738_p8 = pnand %p3737_p7, %p3731_p4 }
 0x165   :  { %3562 = vtanh.f32 %v802_v32 }
 0x166   :  { %3564 = vtanh.f32 %v806_v16 }
 0x167   :  { %3566 = vtanh.f32 %v800_v23 }
 0x168   :  { %3568 = vtanh.f32 %v811_v15 }
 0x16f   :  { %v3563_v17 = vpop.eup %3562 }
 0x170   :  { %v3565_v18 = vpop.eup %3564  ;;  %v804_v19 = vadd.f32 1.0, %v3563_v17 }
 0x171   :  { %v808_v20 = vadd.f32 1.0, %v3565_v18  ;;  %v3567_v22 = vpop.eup %3566 }
 0x172   :  { %v805_v0 = vmul.f32 0.5, %v804_v19  ;;  %v3569_v12 = vpop.eup %3568 }
 0x173   :  { %v809_v10 = vmul.f32 0.5, %v808_v20  ;;  %v813_v23 = vadd.f32 1.0, %v3569_v12 }
 0x174   :  { %v816_v28 = vmul.f32 %v3567_v22, %v805_v0 }
 0x175   :  { %v815_v62 = vmul.f32 %v809_v10, %v88_v21  ;;  %v814_v26 = vmul.f32 0.5, %v813_v23 }
 0x177   :  { %v4157_v8 = vadd.f32 %v816_v28, %v815_v62 }
 0x179   :  { %3570 = vtanh.f32 %v4157_v8 }
 0x183   :  { %v3571_v44 = vpop.eup %3570 }
 0x184   :  { %v4160_v11 = vmul.f32 %v3571_v44, %v814_v26 }
 0x186   :  { %v828_v31 = vpack.c.bf16 %v4160_v11, %v4160_v11 }
 0x188   :  { %1054 = vmatmul.mubr.bf16.vlgmr.msra.gmra.mrb[20].mxu0 %v828_v31  ;;  %1095 = vmatmul.mubr.bf16.vlgmr.msra.gmra.mrb[20].mxu1 %v828_v31 }
 0x189   :  { %1328 = vmatpush1.bf16.msra.mxu0 %v3933_v36  ;;  %1369 = vmatpush1.bf16.msra.mxu1 %v3935_v37 }
 0x18a   :  { %1329 = vmatprep.subr.bf16.mxu0 %v3939_v38  ;;  %1370 = vmatprep.subr.bf16.mxu1 %v3941_v39 }
 0x18b   :  { %1359 = vmatprep.mubr.bf16.mxu0 %v4580_v14  ;;  %1400 = vmatprep.mubr.bf16.mxu1 %v4580_v14 }
 0x18d   :  { %1330 = vmatpush1.bf16.msra.mxu0 %v3943_v40  ;;  %1371 = vmatpush1.bf16.msra.mxu1 %v3947_v41 }
 0x18e   :  { %1331 = vmatprep.subr.bf16.mxu0 %v3951_v42  ;;  %1372 = vmatprep.subr.bf16.mxu1 %v3953_v43 }
 0x191   :  { %1332 = vmatpush1.bf16.msra.mxu0 %v3957_v45  ;;  %1373 = vmatpush1.bf16.msra.mxu1 %v3959_v46 }
 0x192   :  { %1333 = vmatprep.subr.bf16.mxu0 %v3963_v47  ;;  %1374 = vmatprep.subr.bf16.mxu1 %v3967_v48 }
 0x195   :  { %1334 = vmatpush1.bf16.msra.mxu0 %v3969_v49  ;;  %1375 = vmatpush1.bf16.msra.mxu1 %v3971_v50 }
 0x196   :  { %1335 = vmatprep.subr.bf16.mxu0 %v3975_v51  ;;  %1376 = vmatprep.subr.bf16.mxu1 %v3979_v52 }
 0x199   :  { %1336 = vmatpush1.bf16.msra.mxu0 %v3983_v54  ;;  %1377 = vmatpush1.bf16.msra.mxu1 %v3985_v55 }
 0x19a   :  { %1337 = vmatprep.subr.bf16.mxu0 %v3987_v56  ;;  %1378 = vmatprep.subr.bf16.mxu1 %v3989_v57 }
 0x19d   :  { %1338 = vmatpush1.bf16.msra.mxu0 %v3995_v58  ;;  %1379 = vmatpush1.bf16.msra.mxu1 %v3997_v59 }
 0x19e   :  { %1339 = vmatprep.subr.bf16.mxu0 %v3999_v60  ;;  %1380 = vmatprep.subr.bf16.mxu1 %v4001_v61 }
 0x1a1   :  { %1340 = vmatpush1.bf16.msra.mxu0 %v4009_v63  ;;  %1381 = vmatpush1.bf16.msra.mxu1 %v4011_v1 }
 0x1a2   :  { %1341 = vmatprep.subr.bf16.mxu0 %v4013_v2  ;;  %1382 = vmatprep.subr.bf16.mxu1 %v4015_v3 }
 0x1a5   :  { %1342 = vmatpush1.bf16.msra.mxu0 %v4023_v4  ;;  %1383 = vmatpush1.bf16.msra.mxu1 %v4025_v5 }
 0x1a6   :  { %1633 = vmatprep.subr.bf16.mxu0 %v3929_v33  ;;  %1674 = vmatprep.subr.bf16.mxu1 %v3931_v34 }
 0x25b   :  { %v1055_v7 = vpop.f32.mrb[20].mxu0  ;;  %v1096_v9 = vpop.f32.mrb[20].mxu1 }
 0x25c   :  { %v1103_v13 = vadd.f32 %v1055_v7, %v4080_v25  ;;  %v1105_v24 = vadd.f32 %v1096_v9, %v4083_v27  ;;  %v1057_v32 = vpop.f32.mrb[21].mxu0  ;;  %v1098_v16 = vpop.f32.mrb[21].mxu1 }
 0x25d   :  { %v1104_v15 = vadd.f32 %v1057_v32, %v4085_v29  ;;  %v1106_v17 = vadd.f32 %v1098_v16, %v4088_v30  ;;  %v1059_v18 = vpop.f32.mrb[22].mxu0  ;;  %v1100_v19 = vpop.f32.mrb[22].mxu1  ;;  %v4259_v32 = vld [vmem:[#allocation12 + $0x8] ss:$16 sps:$4 sm:$0xff]   ;;  %v4265_v16 = vld [vmem:[#allocation12 + $0x24] ss:$16 sps:$4 sm:$0xff]  }
 0x25e   :  { %v1107_v20 = vmul.f32 0.5, %v1103_v13  ;;  %v1060_v0 = vpop.f32.mrb[23].mxu0  ;;  %v1101_v21 = vpop.f32.mrb[23].mxu1  ;;  %v4271_v18 = vld [vmem:[#allocation12 + $0x28] ss:$16 sps:$4 sm:$0xff]  }
 0x25f   :  { %v1111_v33 = vmul.f32 0.5, %v1104_v15  ;;  %v1116_v34 = vmul.f32 0.5, %v1106_v17  ;;  %v4267_v15 = vld [vmem:[#allocation12 + $0x2c] ss:$16 sps:$4 sm:$0xff]   ;;  %v4269_v17 = vld [vmem:[#allocation12 + $0x20] ss:$16 sps:$4 sm:$0xff]  }
 0x260   :  { %3572 = vtanh.f32 %v1107_v20  ;;  %v4277_v19 = vld [vmem:[#allocation12 + $0x44] ss:$16 sps:$4 sm:$0xff]   ;;  %v4279_v20 = vld [vmem:[#allocation12 + $0x4c] ss:$16 sps:$4 sm:$0xff]   ;;  %v4281_v0 = vld [vmem:[#allocation12 + $0x40] ss:$16 sps:$4 sm:$0xff]  }
 0x261   :  { %3574 = vtanh.f32 %v1111_v33  ;;  %v4283_v21 = vld [vmem:[#allocation12 + $0x48] ss:$16 sps:$4 sm:$0xff]   ;;  %v4289_v33 = vld [vmem:[#allocation12 + $0x64] ss:$16 sps:$4 sm:$0xff]  }
 0x262   :  { %3576 = vtanh.f32 %v1105_v24 }
 0x263   :  { %3578 = vtanh.f32 %v1116_v34  ;;  %v4291_v34 = vld [vmem:[#allocation12 + $0x6c] ss:$16 sps:$4 sm:$0xff]  }
 0x26a   :  { %v3573_v22 = vpop.eup %3572 }
 0x26b   :  { %v3575_v25 = vpop.eup %3574  ;;  %v1109_v10 = vadd.f32 1.0, %v3573_v22  ;;  %v4293_v22 = vld [vmem:[#allocation12 + $0x60] ss:$16 sps:$4 sm:$0xff]  }
 0x26c   :  { %v1113_v27 = vadd.f32 1.0, %v3575_v25  ;;  %v3577_v62 = vpop.eup %3576  ;;  %v4295_v25 = vld [vmem:[#allocation12 + $0x68] ss:$16 sps:$4 sm:$0xff]  }
 0x26d   :  { %v1110_v28 = vmul.f32 0.5, %v1109_v10  ;;  %v3579_v26 = vpop.eup %3578  ;;  %v4301_v10 = vld [vmem:[#allocation12 + $0x84] ss:$16 sps:$4 sm:$0xff]  }
 0x26e   :  { %v1114_v29 = vmul.f32 0.5, %v1113_v27  ;;  %v1118_v44 = vadd.f32 1.0, %v3579_v26  ;;  %v4303_v27 = vld [vmem:[#allocation12 + $0x8c] ss:$16 sps:$4 sm:$0xff]   ;;  %v4325_v26 = vld [vmem:[#allocation12 + $0xc4] ss:$16 sps:$4 sm:$0xff]  }
 0x26f   :  { %v1121_v12 = vmul.f32 %v3577_v62, %v1110_v28  ;;  %v4305_v28 = vld [vmem:[#allocation12 + $0x80] ss:$16 sps:$4 sm:$0xff]   ;;  %v4307_v62 = vld [vmem:[#allocation12 + $0x88] ss:$16 sps:$4 sm:$0xff]  }
 0x270   :  { %v1120_v30 = vmul.f32 %v1114_v29, %v4157_v8  ;;  %v1119_v31 = vmul.f32 0.5, %v1118_v44  ;;  %v4255_v8 = vld [vmem:[#allocation12 + $0xc] ss:$16 sps:$4 sm:$0xff]   ;;  %v4313_v29 = vld [vmem:[#allocation12 + $0xa4] ss:$16 sps:$4 sm:$0xff]  }
 0x271   :  { %v4327_v44 = vld [vmem:[#allocation12 + $0xcc] ss:$16 sps:$4 sm:$0xff]  }
 0x272   :  { %v4203_v23 = vadd.f32 %v1121_v12, %v1120_v30  ;;  %v4315_v12 = vld [vmem:[#allocation12 + $0xac] ss:$16 sps:$4 sm:$0xff]   ;;  %v4317_v30 = vld [vmem:[#allocation12 + $0xa0] ss:$16 sps:$4 sm:$0xff]  }
 0x274   :  { %3580 = vtanh.f32 %v4203_v23 }
 0x27e   :  { %v3581_v7 = vpop.eup %3580 }
 0x27f   :  { %v1124_v9 = vmul.f32 %v3581_v7, %v1119_v31  ;;  %v4329_v31 = vld [vmem:[#allocation12 + $0xc0] ss:$16 sps:$4 sm:$0xff]   ;;  %v4331_v7 = vld [vmem:[#allocation12 + $0xc8] ss:$16 sps:$4 sm:$0xff]  }
 0x281   :  { %v3382_v13 = vpack.c.bf16 %v1124_v9, %v4160_v11  ;;  %v1134_v24 = vpack.c.bf16 %v1124_v9, %v1124_v9  ;;  %v4257_v11 = vld [vmem:[#allocation12] ss:$16 sps:$4 sm:$0xff]   ;;  %v4337_v9 = vld [vmem:[#allocation12 + $0xe4] ss:$16 sps:$4 sm:$0xff]  }
 0x283   :  { %3383 = vst [vmem:[#allocation14] sm:$0xff] %v3382_v13   ;;  %1360 = vmatmul.mubr.bf16.vlgmr.msra.gmra.mrb[24].mxu0 %v1134_v24  ;;  %1401 = vmatmul.mubr.bf16.vlgmr.msra.gmra.mrb[24].mxu1 %v1134_v24  ;;  %v4339_v13 = vld [vmem:[#allocation12 + $0xec] ss:$16 sps:$4 sm:$0xff]   ;;  %v4341_v24 = vld [vmem:[#allocation12 + $0xe0] ss:$16 sps:$4 sm:$0xff]  }
 0x284   :  { %1634 = vmatpush1.bf16.msra.mxu0 %v3933_v36  ;;  %1675 = vmatpush1.bf16.msra.mxu1 %v3935_v37 }
 0x285   :  { %1635 = vmatprep.subr.bf16.mxu0 %v3939_v38  ;;  %1676 = vmatprep.subr.bf16.mxu1 %v3941_v39 }
 0x286   :  { %1665 = vmatprep.mubr.bf16.mxu0 %v4580_v14  ;;  %1706 = vmatprep.mubr.bf16.mxu1 %v4580_v14 }
 0x288   :  { %1636 = vmatpush1.bf16.msra.mxu0 %v3943_v40  ;;  %1677 = vmatpush1.bf16.msra.mxu1 %v3947_v41 }
 0x289   :  { %1637 = vmatprep.subr.bf16.mxu0 %v3951_v42  ;;  %1678 = vmatprep.subr.bf16.mxu1 %v3953_v43  ;;  %v4581_v43 = vld [vmem:[#allocation23_spill] sm:$0xff] }
 0x28c   :  { %1638 = vmatpush1.bf16.msra.mxu0 %v3957_v45  ;;  %1679 = vmatpush1.bf16.msra.mxu1 %v3959_v46 }
 0x28d   :  { %1639 = vmatprep.subr.bf16.mxu0 %v3963_v47  ;;  %1680 = vmatprep.subr.bf16.mxu1 %v3967_v48 }
 0x290   :  { %1640 = vmatpush1.bf16.msra.mxu0 %v3969_v49  ;;  %1681 = vmatpush1.bf16.msra.mxu1 %v3971_v50 }
 0x291   :  { %1641 = vmatprep.subr.bf16.mxu0 %v3975_v51  ;;  %1682 = vmatprep.subr.bf16.mxu1 %v3979_v52 }
 0x294   :  { %1642 = vmatpush1.bf16.msra.mxu0 %v3983_v54  ;;  %1683 = vmatpush1.bf16.msra.mxu1 %v3985_v55 }
 0x295   :  { %1643 = vmatprep.subr.bf16.mxu0 %v3987_v56  ;;  %1684 = vmatprep.subr.bf16.mxu1 %v3989_v57 }
 0x298   :  { %1644 = vmatpush1.bf16.msra.mxu0 %v3995_v58  ;;  %1685 = vmatpush1.bf16.msra.mxu1 %v3997_v59 }
 0x299   :  { %1645 = vmatprep.subr.bf16.mxu0 %v3999_v60  ;;  %1686 = vmatprep.subr.bf16.mxu1 %v4001_v61 }
 0x29c   :  { %1646 = vmatpush1.bf16.msra.mxu0 %v4009_v63  ;;  %1687 = vmatpush1.bf16.msra.mxu1 %v4011_v1 }
 0x29d   :  { %1647 = vmatprep.subr.bf16.mxu0 %v4013_v2  ;;  %1688 = vmatprep.subr.bf16.mxu1 %v4015_v3 }
 0x2a0   :  { %1648 = vmatpush1.bf16.msra.mxu0 %v4023_v4  ;;  %1689 = vmatpush1.bf16.msra.mxu1 %v4025_v5 }
 0x2a1   :  { %1980 = vmatprep.subr.bf16.mxu1 %v4255_v8 }
 0x356   :  { %v1361_v36 = vpop.f32.mrb[24].mxu0  ;;  %v1402_v37 = vpop.f32.mrb[24].mxu1 }
 0x357   :  { %v1409_v38 = vadd.f32 %v1361_v36, %v4090_v35  ;;  %v1411_v39 = vadd.f32 %v1402_v37, %v4093_v53  ;;  %v1363_v40 = vpop.f32.mrb[25].mxu0  ;;  %v1404_v41 = vpop.f32.mrb[25].mxu1  ;;  %v4343_v36 = vld [vmem:[#allocation12 + $0xe8] ss:$16 sps:$4 sm:$0xff]  }
 0x358   :  { %v1410_v42 = vadd.f32 %v1363_v40, %v4095_v6  ;;  %v1412_v45 = vadd.f32 %v1404_v41, %v4581_v43  ;;  %v1365_v46 = vpop.f32.mrb[26].mxu0  ;;  %v1406_v47 = vpop.f32.mrb[26].mxu1  ;;  %v4253_v6 = vld [vmem:[#allocation12 + $0x4] ss:$16 sps:$4 sm:$0xff]  }
 0x359   :  { %v1413_v48 = vmul.f32 0.5, %v1409_v38  ;;  %v1366_v49 = vpop.f32.mrb[27].mxu0  ;;  %v1407_v50 = vpop.f32.mrb[27].mxu1  ;;  %1939 = vmatprep.subr.bf16.mxu0 %v4253_v6  ;;  %v4583_v41 = vld [vmem:[#allocation25_spill] sm:$0xff]  ;;  %v4584_v46 = vld [vmem:[#allocation26_spill] sm:$0xff] }
 0x35a   :  { %v1417_v51 = vmul.f32 0.5, %v1410_v42  ;;  %v1422_v52 = vmul.f32 0.5, %v1412_v45 }
 0x35b   :  { %3582 = vtanh.f32 %v1413_v48  ;;  %v4585_v48 = vld [vmem:[#allocation27_spill] sm:$0xff] }
 0x35c   :  { %3584 = vtanh.f32 %v1417_v51 }
 0x35d   :  { %3586 = vtanh.f32 %v1411_v39  ;;  %v4582_v39 = vld [vmem:[#allocation24_spill] sm:$0xff] }
 0x35e   :  { %3588 = vtanh.f32 %v1422_v52 }
 0x365   :  { %v3583_v54 = vpop.eup %3582 }
 0x366   :  { %v3585_v55 = vpop.eup %3584  ;;  %v1415_v56 = vadd.f32 1.0, %v3583_v54 }
 0x367   :  { %v1419_v57 = vadd.f32 1.0, %v3585_v55  ;;  %v3587_v59 = vpop.eup %3586 }
 0x368   :  { %v1416_v58 = vmul.f32 0.5, %v1415_v56  ;;  %v3589_v2 = vpop.eup %3588 }
 0x369   :  { %v1420_v60 = vmul.f32 0.5, %v1419_v57  ;;  %v1424_v3 = vadd.f32 1.0, %v3589_v2 }
 0x36a   :  { %v1427_v61 = vmul.f32 %v3587_v59, %v1416_v58 }
 0x36b   :  { %v1426_v63 = vmul.f32 %v1420_v60, %v4203_v23  ;;  %v1425_v4 = vmul.f32 0.5, %v1424_v3  ;;  %v4319_v23 = vld [vmem:[#allocation12 + $0xa8] ss:$16 sps:$4 sm:$0xff]  }
 0x36d   :  { %v4244_v1 = vadd.f32 %v1427_v61, %v1426_v63 }
 0x36f   :  { %3590 = vtanh.f32 %v4244_v1 }
 0x379   :  { %v3591_v5 = vpop.eup %3590 }
 0x37a   :  { %v4247_v35 = vmul.f32 %v3591_v5, %v1425_v4 }
 0x37c   :  { %v1440_v53 = vpack.c.bf16 %v4247_v35, %v4247_v35 }
 0x37e   :  { %1666 = vmatmul.mubr.bf16.vlgmr.msra.gmra.mrb[28].mxu0 %v1440_v53  ;;  %1707 = vmatmul.mubr.bf16.vlgmr.msra.gmra.mrb[28].mxu1 %v1440_v53 }
 0x37f   :  { %1971 = vmatprep.mubr.bf16.mxu0 %v4580_v14  ;;  %2012 = vmatprep.mubr.bf16.mxu1 %v4580_v14 }
 0x380   :  { %1940 = vmatpush1.bf16.msra.mxu0 %v4257_v11  ;;  %1981 = vmatpush1.bf16.msra.mxu1 %v4259_v32 }
 0x381   :  { %1941 = vmatprep.subr.bf16.mxu0 %v4265_v16  ;;  %1982 = vmatprep.subr.bf16.mxu1 %v4267_v15 }
 0x384   :  { %1942 = vmatpush1.bf16.msra.mxu0 %v4269_v17  ;;  %1983 = vmatpush1.bf16.msra.mxu1 %v4271_v18 }
 0x385   :  { %1943 = vmatprep.subr.bf16.mxu0 %v4277_v19  ;;  %1984 = vmatprep.subr.bf16.mxu1 %v4279_v20 }
 0x388   :  { %1944 = vmatpush1.bf16.msra.mxu0 %v4281_v0  ;;  %1985 = vmatpush1.bf16.msra.mxu1 %v4283_v21 }
 0x389   :  { %1945 = vmatprep.subr.bf16.mxu0 %v4289_v33  ;;  %1986 = vmatprep.subr.bf16.mxu1 %v4291_v34 }
 0x38c   :  { %1946 = vmatpush1.bf16.msra.mxu0 %v4293_v22  ;;  %1987 = vmatpush1.bf16.msra.mxu1 %v4295_v25 }
 0x38d   :  { %1947 = vmatprep.subr.bf16.mxu0 %v4301_v10  ;;  %1988 = vmatprep.subr.bf16.mxu1 %v4303_v27 }
 0x390   :  { %1948 = vmatpush1.bf16.msra.mxu0 %v4305_v28  ;;  %1989 = vmatpush1.bf16.msra.mxu1 %v4307_v62 }
 0x391   :  { %1949 = vmatprep.subr.bf16.mxu0 %v4313_v29  ;;  %1990 = vmatprep.subr.bf16.mxu1 %v4315_v12 }
 0x394   :  { %1950 = vmatpush1.bf16.msra.mxu0 %v4317_v30  ;;  %1991 = vmatpush1.bf16.msra.mxu1 %v4319_v23 }
 0x395   :  { %1951 = vmatprep.subr.bf16.mxu0 %v4325_v26  ;;  %1992 = vmatprep.subr.bf16.mxu1 %v4327_v44 }
 0x398   :  { %1952 = vmatpush1.bf16.msra.mxu0 %v4329_v31  ;;  %1993 = vmatpush1.bf16.msra.mxu1 %v4331_v7 }
 0x399   :  { %1953 = vmatprep.subr.bf16.mxu0 %v4337_v9  ;;  %1994 = vmatprep.subr.bf16.mxu1 %v4339_v13 }
 0x39c   :  { %1954 = vmatpush1.bf16.msra.mxu0 %v4341_v24  ;;  %1995 = vmatpush1.bf16.msra.mxu1 %v4343_v36 }
 0x39d   :  { %2245 = vmatprep.subr.bf16.mxu0 %v4253_v6  ;;  %2286 = vmatprep.subr.bf16.mxu1 %v4255_v8 }
 0x451   :  { %v1667_v37 = vpop.f32.mrb[28].mxu0  ;;  %v1708_v38 = vpop.f32.mrb[28].mxu1 }
 0x452   :  { %v1715_v40 = vadd.f32 %v1667_v37, %v4582_v39  ;;  %v1717_v42 = vadd.f32 %v1708_v38, %v4583_v41  ;;  %v1669_v43 = vpop.f32.mrb[29].mxu0  ;;  %v1710_v45 = vpop.f32.mrb[29].mxu1 }
 0x453   :  { %v1716_v47 = vadd.f32 %v1669_v43, %v4584_v46  ;;  %v1718_v49 = vadd.f32 %v1710_v45, %v4585_v48  ;;  %v1671_v50 = vpop.f32.mrb[30].mxu0  ;;  %v1712_v51 = vpop.f32.mrb[30].mxu1  ;;  %v4586_v45 = vld [vmem:[#allocation28_spill] sm:$0xff] }
 0x454   :  { %v1719_v52 = vmul.f32 0.5, %v1715_v40  ;;  %v1672_v54 = vpop.f32.mrb[31].mxu0  ;;  %v1713_v55 = vpop.f32.mrb[31].mxu1  ;;  %v4588_v51 = vld [vmem:[#allocation30_spill] sm:$0xff] }
 0x455   :  { %v1723_v56 = vmul.f32 0.5, %v1716_v47  ;;  %v1728_v57 = vmul.f32 0.5, %v1718_v49  ;;  %v4587_v47 = vld [vmem:[#allocation29_spill] sm:$0xff]  ;;  %v4589_v54 = vld [vmem:[#allocation31_spill] sm:$0xff] }
 0x456   :  { %3592 = vtanh.f32 %v1719_v52 }
 0x457   :  { %3594 = vtanh.f32 %v1723_v56 }
 0x458   :  { %3596 = vtanh.f32 %v1717_v42 }
 0x459   :  { %3598 = vtanh.f32 %v1728_v57 }
 0x460   :  { %v3593_v58 = vpop.eup %3592 }
 0x461   :  { %v3595_v59 = vpop.eup %3594  ;;  %v1721_v60 = vadd.f32 1.0, %v3593_v58 }
 0x462   :  { %v1725_v61 = vadd.f32 1.0, %v3595_v59  ;;  %v3597_v2 = vpop.eup %3596 }
 0x463   :  { %v1722_v63 = vmul.f32 0.5, %v1721_v60  ;;  %v3599_v37 = vpop.eup %3598 }
 0x464   :  { %v1726_v3 = vmul.f32 0.5, %v1725_v61  ;;  %v1730_v38 = vadd.f32 1.0, %v3599_v37 }
 0x465   :  { %v1733_v4 = vmul.f32 %v3597_v2, %v1722_v63 }
 0x466   :  { %v1732_v5 = vmul.f32 %v1726_v3, %v4244_v1  ;;  %v1731_v39 = vmul.f32 0.5, %v1730_v38 }
 0x468   :  { %v4356_v53 = vadd.f32 %v1733_v4, %v1732_v5 }
 0x46a   :  { %3600 = vtanh.f32 %v4356_v53 }
 0x474   :  { %v3601_v40 = vpop.eup %3600 }
 0x475   :  { %v1736_v41 = vmul.f32 %v3601_v40, %v1731_v39 }
 0x477   :  { %v3387_v42 = vpack.c.bf16 %v1736_v41, %v4247_v35  ;;  %v1746_v43 = vpack.c.bf16 %v1736_v41, %v1736_v41 }
 0x479   :  { %3399 = vst [vmem:[#allocation14 + $0x8] sm:$0xff] %v3387_v42   ;;  %1972 = vmatmul.mubr.bf16.vlgmr.msra.gmra.mrb[32].mxu0 %v1746_v43  ;;  %2013 = vmatmul.mubr.bf16.vlgmr.msra.gmra.mrb[32].mxu1 %v1746_v43 }
 0x47a   :  { %2246 = vmatpush1.bf16.msra.mxu0 %v4257_v11  ;;  %2287 = vmatpush1.bf16.msra.mxu1 %v4259_v32 }
 0x47b   :  { %2247 = vmatprep.subr.bf16.mxu0 %v4265_v16  ;;  %2288 = vmatprep.subr.bf16.mxu1 %v4267_v15 }
 0x47c   :  { %2277 = vmatprep.mubr.bf16.mxu0 %v4580_v14  ;;  %2318 = vmatprep.mubr.bf16.mxu1 %v4580_v14 }
 0x47e   :  { %2248 = vmatpush1.bf16.msra.mxu0 %v4269_v17  ;;  %2289 = vmatpush1.bf16.msra.mxu1 %v4271_v18 }
 0x47f   :  { %2249 = vmatprep.subr.bf16.mxu0 %v4277_v19  ;;  %2290 = vmatprep.subr.bf16.mxu1 %v4279_v20 }
 0x482   :  { %2250 = vmatpush1.bf16.msra.mxu0 %v4281_v0  ;;  %2291 = vmatpush1.bf16.msra.mxu1 %v4283_v21 }
 0x483   :  { %2251 = vmatprep.subr.bf16.mxu0 %v4289_v33  ;;  %2292 = vmatprep.subr.bf16.mxu1 %v4291_v34 }
 0x486   :  { %2252 = vmatpush1.bf16.msra.mxu0 %v4293_v22  ;;  %2293 = vmatpush1.bf16.msra.mxu1 %v4295_v25 }
 0x487   :  { %2253 = vmatprep.subr.bf16.mxu0 %v4301_v10  ;;  %2294 = vmatprep.subr.bf16.mxu1 %v4303_v27 }
 0x48a   :  { %2254 = vmatpush1.bf16.msra.mxu0 %v4305_v28  ;;  %2295 = vmatpush1.bf16.msra.mxu1 %v4307_v62 }
 0x48b   :  { %2255 = vmatprep.subr.bf16.mxu0 %v4313_v29  ;;  %2296 = vmatprep.subr.bf16.mxu1 %v4315_v12 }
 0x48e   :  { %2256 = vmatpush1.bf16.msra.mxu0 %v4317_v30  ;;  %2297 = vmatpush1.bf16.msra.mxu1 %v4319_v23 }
 0x48f   :  { %2257 = vmatprep.subr.bf16.mxu0 %v4325_v26  ;;  %2298 = vmatprep.subr.bf16.mxu1 %v4327_v44 }
 0x492   :  { %2258 = vmatpush1.bf16.msra.mxu0 %v4329_v31  ;;  %2299 = vmatpush1.bf16.msra.mxu1 %v4331_v7 }
 0x493   :  { %2259 = vmatprep.subr.bf16.mxu0 %v4337_v9  ;;  %2300 = vmatprep.subr.bf16.mxu1 %v4339_v13 }
 0x496   :  { %2260 = vmatpush1.bf16.msra.mxu0 %v4341_v24  ;;  %2301 = vmatpush1.bf16.msra.mxu1 %v4343_v36 }
 0x497   :  { %2551 = vmatprep.subr.bf16.mxu0 %v4253_v6  ;;  %2592 = vmatprep.subr.bf16.mxu1 %v4255_v8 }
 0x54c   :  { %v1973_v1 = vpop.f32.mrb[32].mxu0  ;;  %v2014_v35 = vpop.f32.mrb[32].mxu1 }
 0x54d   :  { %v2021_v46 = vadd.f32 %v1973_v1, %v4586_v45  ;;  %v2023_v48 = vadd.f32 %v2014_v35, %v4587_v47  ;;  %v1975_v49 = vpop.f32.mrb[33].mxu0  ;;  %v2016_v50 = vpop.f32.mrb[33].mxu1 }
 0x54e   :  { %v2022_v52 = vadd.f32 %v1975_v49, %v4588_v51  ;;  %v2024_v55 = vadd.f32 %v2016_v50, %v4589_v54  ;;  %v1977_v56 = vpop.f32.mrb[34].mxu0  ;;  %v2018_v57 = vpop.f32.mrb[34].mxu1  ;;  %v4590_v49 = vld [vmem:[#allocation32_spill] sm:$0xff]  ;;  %v4591_v51 = vld [vmem:[#allocation33_spill] sm:$0xff] }
 0x54f   :  { %v2025_v58 = vmul.f32 0.5, %v2021_v46  ;;  %v1978_v59 = vpop.f32.mrb[35].mxu0  ;;  %v2019_v60 = vpop.f32.mrb[35].mxu1  ;;  %v4592_v56 = vld [vmem:[#allocation34_spill] sm:$0xff] }
 0x550   :  { %v2029_v61 = vmul.f32 0.5, %v2022_v52  ;;  %v2034_v63 = vmul.f32 0.5, %v2024_v55 }
 0x551   :  { %3602 = vtanh.f32 %v2025_v58  ;;  %v4593_v58 = vld [vmem:[#allocation35_spill] sm:$0xff] }
 0x552   :  { %3604 = vtanh.f32 %v2029_v61 }
 0x553   :  { %3606 = vtanh.f32 %v2023_v48 }
 0x554   :  { %3608 = vtanh.f32 %v2034_v63 }
 0x55b   :  { %v3603_v2 = vpop.eup %3602 }
 0x55c   :  { %v3605_v3 = vpop.eup %3604  ;;  %v2027_v4 = vadd.f32 1.0, %v3603_v2 }
 0x55d   :  { %v2031_v5 = vadd.f32 1.0, %v3605_v3  ;;  %v3607_v38 = vpop.eup %3606 }
 0x55e   :  { %v2028_v37 = vmul.f32 0.5, %v2027_v4  ;;  %v3609_v43 = vpop.eup %3608 }
 0x55f   :  { %v2032_v39 = vmul.f32 0.5, %v2031_v5  ;;  %v2036_v1 = vadd.f32 1.0, %v3609_v43 }
 0x560   :  { %v2039_v40 = vmul.f32 %v3607_v38, %v2028_v37 }
 0x561   :  { %v2038_v41 = vmul.f32 %v2032_v39, %v4356_v53  ;;  %v2037_v35 = vmul.f32 0.5, %v2036_v1 }
 0x563   :  { %v4399_v42 = vadd.f32 %v2039_v40, %v2038_v41 }
 0x565   :  { %3610 = vtanh.f32 %v4399_v42 }
 0x56f   :  { %v3611_v45 = vpop.eup %3610 }
 0x570   :  { %v4402_v46 = vmul.f32 %v3611_v45, %v2037_v35 }
 0x572   :  { %v2052_v47 = vpack.c.bf16 %v4402_v46, %v4402_v46 }
 0x574   :  { %2278 = vmatmul.mubr.bf16.vlgmr.msra.gmra.mrb[36].mxu0 %v2052_v47  ;;  %2319 = vmatmul.mubr.bf16.vlgmr.msra.gmra.mrb[36].mxu1 %v2052_v47 }
 0x575   :  { %2552 = vmatpush1.bf16.msra.mxu0 %v4257_v11  ;;  %2593 = vmatpush1.bf16.msra.mxu1 %v4259_v32 }
 0x576   :  { %2553 = vmatprep.subr.bf16.mxu0 %v4265_v16  ;;  %2594 = vmatprep.subr.bf16.mxu1 %v4267_v15 }
 0x577   :  { %2583 = vmatprep.mubr.bf16.mxu0 %v4580_v14  ;;  %2624 = vmatprep.mubr.bf16.mxu1 %v4580_v14 }
 0x579   :  { %2554 = vmatpush1.bf16.msra.mxu0 %v4269_v17  ;;  %2595 = vmatpush1.bf16.msra.mxu1 %v4271_v18 }
 0x57a   :  { %2555 = vmatprep.subr.bf16.mxu0 %v4277_v19  ;;  %2596 = vmatprep.subr.bf16.mxu1 %v4279_v20 }
 0x57d   :  { %2556 = vmatpush1.bf16.msra.mxu0 %v4281_v0  ;;  %2597 = vmatpush1.bf16.msra.mxu1 %v4283_v21 }
 0x57e   :  { %2557 = vmatprep.subr.bf16.mxu0 %v4289_v33  ;;  %2598 = vmatprep.subr.bf16.mxu1 %v4291_v34 }
 0x581   :  { %2558 = vmatpush1.bf16.msra.mxu0 %v4293_v22  ;;  %2599 = vmatpush1.bf16.msra.mxu1 %v4295_v25 }
 0x582   :  { %2559 = vmatprep.subr.bf16.mxu0 %v4301_v10  ;;  %2600 = vmatprep.subr.bf16.mxu1 %v4303_v27 }
 0x585   :  { %2560 = vmatpush1.bf16.msra.mxu0 %v4305_v28  ;;  %2601 = vmatpush1.bf16.msra.mxu1 %v4307_v62 }
 0x586   :  { %2561 = vmatprep.subr.bf16.mxu0 %v4313_v29  ;;  %2602 = vmatprep.subr.bf16.mxu1 %v4315_v12 }
 0x589   :  { %2562 = vmatpush1.bf16.msra.mxu0 %v4317_v30  ;;  %2603 = vmatpush1.bf16.msra.mxu1 %v4319_v23 }
 0x58a   :  { %2563 = vmatprep.subr.bf16.mxu0 %v4325_v26  ;;  %2604 = vmatprep.subr.bf16.mxu1 %v4327_v44 }
 0x58d   :  { %2564 = vmatpush1.bf16.msra.mxu0 %v4329_v31  ;;  %2605 = vmatpush1.bf16.msra.mxu1 %v4331_v7 }
 0x58e   :  { %2565 = vmatprep.subr.bf16.mxu0 %v4337_v9  ;;  %2606 = vmatprep.subr.bf16.mxu1 %v4339_v13 }
 0x591   :  { %2566 = vmatpush1.bf16.msra.mxu0 %v4341_v24  ;;  %2607 = vmatpush1.bf16.msra.mxu1 %v4343_v36 }
 0x592   :  { %2857 = vmatprep.subr.bf16.mxu0 %v4253_v6  ;;  %2898 = vmatprep.subr.bf16.mxu1 %v4255_v8 }
 0x647   :  { %v2279_v53 = vpop.f32.mrb[36].mxu0  ;;  %v2320_v48 = vpop.f32.mrb[36].mxu1 }
 0x648   :  { %v2327_v50 = vadd.f32 %v2279_v53, %v4590_v49  ;;  %v2329_v52 = vadd.f32 %v2320_v48, %v4591_v51  ;;  %v2281_v54 = vpop.f32.mrb[37].mxu0  ;;  %v2322_v55 = vpop.f32.mrb[37].mxu1 }
 0x649   :  { %v2328_v57 = vadd.f32 %v2281_v54, %v4592_v56  ;;  %v2330_v59 = vadd.f32 %v2322_v55, %v4593_v58  ;;  %v2283_v60 = vpop.f32.mrb[38].mxu0  ;;  %v2324_v61 = vpop.f32.mrb[38].mxu1 }
 0x64a   :  { %v2331_v63 = vmul.f32 0.5, %v2327_v50  ;;  %v2284_v2 = vpop.f32.mrb[39].mxu0  ;;  %v2325_v3 = vpop.f32.mrb[39].mxu1 }
 0x64b   :  { %v2335_v6 = vmul.f32 0.5, %v2328_v57  ;;  %v2340_v8 = vmul.f32 0.5, %v2330_v59  ;;  %v4598_v57 = vld [vmem:[#allocation40_spill] sm:$0xff]  ;;  %v4599_v59 = vld [vmem:[#allocation41_spill] sm:$0xff]  ;;  %v4600_v2 = vld [vmem:[#allocation42_spill] sm:$0xff] }
 0x64c   :  { %3612 = vtanh.f32 %v2331_v63 }
 0x64d   :  { %3614 = vtanh.f32 %v2335_v6  ;;  %v4601_v6 = vld [vmem:[#allocation43_spill] sm:$0xff] }
 0x64e   :  { %3616 = vtanh.f32 %v2329_v52 }
 0x64f   :  { %3618 = vtanh.f32 %v2340_v8 }
 0x656   :  { %v3613_v4 = vpop.eup %3612 }
 0x657   :  { %v3615_v5 = vpop.eup %3614  ;;  %v2333_v37 = vadd.f32 1.0, %v3613_v4 }
 0x658   :  { %v2337_v38 = vadd.f32 1.0, %v3615_v5  ;;  %v3617_v40 = vpop.eup %3616 }
 0x659   :  { %v2334_v39 = vmul.f32 0.5, %v2333_v37  ;;  %v3619_v45 = vpop.eup %3618 }
 0x65a   :  { %v2338_v41 = vmul.f32 0.5, %v2337_v38  ;;  %v2342_v47 = vadd.f32 1.0, %v3619_v45 }
 0x65b   :  { %v2345_v43 = vmul.f32 %v3617_v40, %v2334_v39 }
 0x65c   :  { %v2344_v1 = vmul.f32 %v2338_v41, %v4399_v42  ;;  %v2343_v53 = vmul.f32 0.5, %v2342_v47 }
 0x65e   :  { %v4445_v35 = vadd.f32 %v2345_v43, %v2344_v1 }
 0x660   :  { %3620 = vtanh.f32 %v4445_v35 }
 0x66a   :  { %v3621_v48 = vpop.eup %3620 }
 0x66b   :  { %v2348_v49 = vmul.f32 %v3621_v48, %v2343_v53 }
 0x66d   :  { %v3392_v50 = vpack.c.bf16 %v2348_v49, %v4402_v46  ;;  %v2358_v51 = vpack.c.bf16 %v2348_v49, %v2348_v49 }
 0x66f   :  { %3400 = vst [vmem:[#allocation14 + $0x10] sm:$0xff] %v3392_v50   ;;  %2584 = vmatmul.mubr.bf16.vlgmr.msra.gmra.mrb[40].mxu0 %v2358_v51  ;;  %2625 = vmatmul.mubr.bf16.vlgmr.msra.gmra.mrb[40].mxu1 %v2358_v51 }
 0x670   :  { %2858 = vmatpush1.bf16.msra.mxu0 %v4257_v11  ;;  %2899 = vmatpush1.bf16.msra.mxu1 %v4259_v32  ;;  %v4594_v32 = vld [vmem:[#allocation36_spill] sm:$0xff] }
 0x671   :  { %2859 = vmatprep.subr.bf16.mxu0 %v4265_v16  ;;  %2900 = vmatprep.subr.bf16.mxu1 %v4267_v15  ;;  %v4595_v15 = vld [vmem:[#allocation37_spill] sm:$0xff] }
 0x672   :  { %2889 = vmatprep.mubr.bf16.mxu0 %v4580_v14  ;;  %2930 = vmatprep.mubr.bf16.mxu1 %v4580_v14 }
 0x674   :  { %2860 = vmatpush1.bf16.msra.mxu0 %v4269_v17  ;;  %2901 = vmatpush1.bf16.msra.mxu1 %v4271_v18 }
 0x675   :  { %2861 = vmatprep.subr.bf16.mxu0 %v4277_v19  ;;  %2902 = vmatprep.subr.bf16.mxu1 %v4279_v20  ;;  %v4596_v20 = vld [vmem:[#allocation38_spill] sm:$0xff] }
 0x678   :  { %2862 = vmatpush1.bf16.msra.mxu0 %v4281_v0  ;;  %2903 = vmatpush1.bf16.msra.mxu1 %v4283_v21  ;;  %v4597_v21 = vld [vmem:[#allocation39_spill] sm:$0xff] }
 0x679   :  { %2863 = vmatprep.subr.bf16.mxu0 %v4289_v33  ;;  %2904 = vmatprep.subr.bf16.mxu1 %v4291_v34 }
 0x67c   :  { %2864 = vmatpush1.bf16.msra.mxu0 %v4293_v22  ;;  %2905 = vmatpush1.bf16.msra.mxu1 %v4295_v25 }
 0x67d   :  { %2865 = vmatprep.subr.bf16.mxu0 %v4301_v10  ;;  %2906 = vmatprep.subr.bf16.mxu1 %v4303_v27 }
 0x680   :  { %2866 = vmatpush1.bf16.msra.mxu0 %v4305_v28  ;;  %2907 = vmatpush1.bf16.msra.mxu1 %v4307_v62 }
 0x681   :  { %2867 = vmatprep.subr.bf16.mxu0 %v4313_v29  ;;  %2908 = vmatprep.subr.bf16.mxu1 %v4315_v12 }
 0x684   :  { %2868 = vmatpush1.bf16.msra.mxu0 %v4317_v30  ;;  %2909 = vmatpush1.bf16.msra.mxu1 %v4319_v23 }
 0x685   :  { %2869 = vmatprep.subr.bf16.mxu0 %v4325_v26  ;;  %2910 = vmatprep.subr.bf16.mxu1 %v4327_v44 }
 0x688   :  { %2870 = vmatpush1.bf16.msra.mxu0 %v4329_v31  ;;  %2911 = vmatpush1.bf16.msra.mxu1 %v4331_v7 }
 0x689   :  { %2871 = vmatprep.subr.bf16.mxu0 %v4337_v9  ;;  %2912 = vmatprep.subr.bf16.mxu1 %v4339_v13 }
 0x68c   :  { %2872 = vmatpush1.bf16.msra.mxu0 %v4341_v24  ;;  %2913 = vmatpush1.bf16.msra.mxu1 %v4343_v36 }
 0x742   :  { %v2585_v14 = vpop.f32.mrb[40].mxu0  ;;  %v2626_v11 = vpop.f32.mrb[40].mxu1 }
 0x743   :  { %v2633_v16 = vadd.f32 %v2585_v14, %v4594_v32  ;;  %v2635_v17 = vadd.f32 %v2626_v11, %v4595_v15  ;;  %v2587_v18 = vpop.f32.mrb[41].mxu0  ;;  %v2628_v19 = vpop.f32.mrb[41].mxu1 }
 0x744   :  { %v2634_v0 = vadd.f32 %v2587_v18, %v4596_v20  ;;  %v2636_v33 = vadd.f32 %v2628_v19, %v4597_v21  ;;  %v2589_v34 = vpop.f32.mrb[42].mxu0  ;;  %v2630_v22 = vpop.f32.mrb[42].mxu1 }
 0x745   :  { %v2637_v25 = vmul.f32 0.5, %v2633_v16  ;;  %v2590_v10 = vpop.f32.mrb[43].mxu0  ;;  %v2631_v27 = vpop.f32.mrb[43].mxu1 }
 0x746   :  { %v2641_v28 = vmul.f32 0.5, %v2634_v0  ;;  %v2646_v62 = vmul.f32 0.5, %v2636_v33 }
 0x747   :  { %3622 = vtanh.f32 %v2637_v25 }
 0x748   :  { %3624 = vtanh.f32 %v2641_v28 }
 0x749   :  { %3626 = vtanh.f32 %v2635_v17 }
 0x74a   :  { %3628 = vtanh.f32 %v2646_v62 }
 0x751   :  { %v3623_v29 = vpop.eup %3622 }
 0x752   :  { %v3625_v12 = vpop.eup %3624  ;;  %v2639_v30 = vadd.f32 1.0, %v3623_v29 }
 0x753   :  { %v2643_v23 = vadd.f32 1.0, %v3625_v12  ;;  %v3627_v44 = vpop.eup %3626 }
 0x754   :  { %v2640_v26 = vmul.f32 0.5, %v2639_v30  ;;  %v3629_v24 = vpop.eup %3628 }
 0x755   :  { %v2644_v31 = vmul.f32 0.5, %v2643_v23  ;;  %v2648_v36 = vadd.f32 1.0, %v3629_v24 }
 0x756   :  { %v2651_v7 = vmul.f32 %v3627_v44, %v2640_v26 }
 0x757   :  { %v2650_v9 = vmul.f32 %v2644_v31, %v4445_v35  ;;  %v2649_v42 = vmul.f32 0.5, %v2648_v36 }
 0x759   :  { %v2652_v13 = vadd.f32 %v2651_v7, %v2650_v9 }
 0x75b   :  { %3630 = vtanh.f32 %v2652_v13 }
 0x765   :  { %v3631_v46 = vpop.eup %3630 }
 0x766   :  { %v4486_v52 = vmul.f32 %v3631_v46, %v2649_v42 }
 0x768   :  { %v2664_v54 = vpack.c.bf16 %v4486_v52, %v4486_v52 }
 0x76a   :  { %2890 = vmatmul.mubr.bf16.vlgmr.msra.gmra.mrb[44].mxu0 %v2664_v54  ;;  %2931 = vmatmul.mubr.bf16.vlgmr.msra.gmra.mrb[44].mxu1 %v2664_v54 }
 0x83d   :  { %v2891_v55 = vpop.f32.mrb[44].mxu0  ;;  %v2932_v56 = vpop.f32.mrb[44].mxu1 }
 0x83e   :  { %v2939_v58 = vadd.f32 %v2891_v55, %v4598_v57  ;;  %v2941_v60 = vadd.f32 %v2932_v56, %v4599_v59  ;;  %v2893_v61 = vpop.f32.mrb[45].mxu0  ;;  %v2934_v63 = vpop.f32.mrb[45].mxu1 }
 0x83f   :  { %v2940_v3 = vadd.f32 %v2893_v61, %v4600_v2  ;;  %v2942_v8 = vadd.f32 %v2934_v63, %v4601_v6  ;;  %v2895_v4 = vpop.f32.mrb[46].mxu0  ;;  %v2936_v5 = vpop.f32.mrb[46].mxu1 }
 0x840   :  { %v2943_v37 = vmul.f32 0.5, %v2939_v58  ;;  %v2896_v38 = vpop.f32.mrb[47].mxu0  ;;  %v2937_v39 = vpop.f32.mrb[47].mxu1 }
 0x841   :  { %v2947_v40 = vmul.f32 0.5, %v2940_v3  ;;  %v2952_v41 = vmul.f32 0.5, %v2942_v8 }
 0x842   :  { %3632 = vtanh.f32 %v2943_v37 }
 0x843   :  { %3634 = vtanh.f32 %v2947_v40 }
 0x844   :  { %3636 = vtanh.f32 %v2941_v60 }
 0x845   :  { %3638 = vtanh.f32 %v2952_v41 }
 0x84c   :  { %v3633_v43 = vpop.eup %3632 }
 0x84d   :  { %v3635_v1 = vpop.eup %3634  ;;  %v2945_v35 = vadd.f32 1.0, %v3633_v43 }
 0x84e   :  { %v2949_v45 = vadd.f32 1.0, %v3635_v1  ;;  %v3637_v53 = vpop.eup %3636 }
 0x84f   :  { %v2946_v47 = vmul.f32 0.5, %v2945_v35  ;;  %v3639_v14 = vpop.eup %3638 }
 0x850   :  { %v2950_v48 = vmul.f32 0.5, %v2949_v45  ;;  %v2954_v11 = vadd.f32 1.0, %v3639_v14 }
 0x851   :  { %v2957_v49 = vmul.f32 %v3637_v53, %v2946_v47 }
 0x852   :  { %v2956_v50 = vmul.f32 %v2950_v48, %v2652_v13  ;;  %v2955_v32 = vmul.f32 0.5, %v2954_v11 }
 0x854   :  { %v2958_v51 = vadd.f32 %v2957_v49, %v2956_v50 }
 0x856   :  { %3640 = vtanh.f32 %v2958_v51  ;;  %3017 = vst [vmem:[#allocation17] sm:$0xff] %v2958_v51 }
 0x860   :  { %v3641_v16 = vpop.eup %3640 }
 0x861   :  { %v2960_v15 = vmul.f32 %v3641_v16, %v2955_v32 }
 0x863   :  { %v3397_v17 = vpack.c.bf16 %v2960_v15, %v4486_v52  ;;  %3016 = vst [vmem:[#allocation15] sm:$0xff] %v2960_v15 }
 0x864   :  { %3741 = shalt.err (!%p3738_p8)
}
 0x865   :  { %s3742_s0 = scalar_lea.hbm %s4555_s7, 128 }
 0x866   :  { %p3743_p9 = scmp.ne.s32.totalorder %s4555_s7, %s3742_s0  ;;  %p3746_p10 = scmp.lt.u32.totalorder %s3742_s0, %s4555_s7 }
 0x868   :  { %p3748_p11 = pnand %p3746_p10, %p3743_p9 }
 0x86a   :  { %3751 = shalt.err (!%p3748_p11)
}
 0x86b   :  { %3039 = dma.vmem_to_hbm [thread:$0]  %s3037_s13, 128, %s4555_s7, [#allocation16]   ;;  %3401 = vst [vmem:[#allocation14 + $0x18] sm:$0xff] %v3397_v17  }
 0x86c   :  { %s3752_s30 = scalar_lea.vmem %s4494_s17, 128  ;;  %p3757_p13 = scmp.lt.s32.totalorder %s4494_s17, %s4494_s17 }
 0x86d   :  { %p3753_p12 = scmp.ne.s32.totalorder %s4494_s17, %s3752_s30  ;;  %p3758_p0 = scmp.lt.s32.totalorder %s3752_s30, %s3752_s30 }
 0x86f   :  { %p3759_p1 = por %p3758_p0, %p3757_p13 }
 0x871   :  { %p3760_p2 = pnand %p3759_p1, %p3753_p12 }
 0x873   :  { %3763 = shalt.err (!%p3760_p2)
}
 0x874   :  { %s3764_s12 = scalar_lea.hbm %s4556_s8, 128 }
 0x875   :  { %p3765_p3 = scmp.ne.s32.totalorder %s4556_s8, %s3764_s12  ;;  %p3768_p4 = scmp.lt.u32.totalorder %s3764_s12, %s4556_s8 }
 0x877   :  { %p3770_p5 = pnand %p3768_p4, %p3765_p3 }
 0x879   :  { %3773 = shalt.err (!%p3770_p5)
}
 0x87a   :  { %3049 = dma.vmem_to_hbm [thread:$0]  %s4494_s17, 128, %s4556_s8, [#allocation16]  }
 0x87b   :  { %s3774_s16 = scalar_lea.vmem %s4497_s19, 512  ;;  %p3779_p7 = scmp.lt.s32.totalorder %s4497_s19, %s4497_s19 }
 0x87c   :  { %p3775_p6 = scmp.ne.s32.totalorder %s4497_s19, %s3774_s16  ;;  %p3780_p8 = scmp.lt.s32.totalorder %s3774_s16, %s3774_s16 }
 0x87e   :  { %p3781_p9 = por %p3780_p8, %p3779_p7 }
 0x880   :  { %p3782_p10 = pnand %p3781_p9, %p3775_p6 }
 0x882   :  { %3785 = shalt.err (!%p3782_p10)
}
 0x883   :  { %s3786_s14 = scalar_lea.hbm %s4554_s6, 512 }
 0x884   :  { %p3787_p11 = scmp.ne.s32.totalorder %s4554_s6, %s3786_s14  ;;  %p3790_p12 = scmp.lt.u32.totalorder %s3786_s14, %s4554_s6 }
 0x886   :  { %p3792_p13 = pnand %p3790_p12, %p3787_p11 }
 0x888   :  { %3795 = shalt.err (!%p3792_p13)
}
 0x889   :  { %3029 = dma.vmem_to_hbm [thread:$0]  %s4497_s19, 512, %s4554_s6, [#allocation8], %s3810_s1, %s3810_s1, %s3811_s28  }
 0x88a   :  { %3802 = dma.done.wait [#allocation8], 512  }
 0x88b   :  { %3803 = vsyncadd [#allocation8], 4294966784 }
 0x88c   :  { %3804 = dma.done.wait [#allocation16], 256  }
 0x88d   :  { %3805 = vsyncadd [#allocation16], 4294967040 }
 0x88e   :  { %3059 = vsyncpa [#allocation7], 1 }
 0x88f   :  { %3060 = vsyncpa [#allocation10], 1 }
 0x890   :  { %3061 = vsyncpa [#allocation13], 1 }
 0x891   :  { %3062 = vsyncpa [#allocation8], 1 }
 0x892   :  { %3063 = vsyncpa [#allocation16], 1 }

</bundles_post_ra>
